<compile_context>
chip_gen: v6e
topology: v6e:2x2x1
jax: 0.10.0
libtpu: 0.0.40
codegen_flags: <defaults>
</compile_context>

<pallas_src>
import functools

import jax
import jax.numpy as jnp
from jax import lax
from jax.experimental import pallas as pl
from jax.experimental.pallas import tpu as pltpu

LANES = 128
SMALL_CIN = 32      # <= this: keep Cin unpadded, fold all 9 taps into K
M_TARGET = 256      # target output pixels (matmul M rows) per row strip


def _conv3x3_bn_relu_kernel(x0_ref, x1_ref, x2_ref, w_ref, scale_ref,
                            bias_ref, o_ref, *, merge_taps):
    """One (batch, cout_tile, row_strip) grid step.

    x{0,1,2}_ref: (1, TH, W+2, C)   dy = 0/1/2 shifted zero-padded strips (bf16)
    w_ref:        (9*C, Ct) if merge_taps else (3, 3*C, Ct)           (bf16)
    scale_ref:    (1, Ct)   folded BN scale (f32)
    bias_ref:     (1, Ct)   folded BN bias  (f32)
    o_ref:        (1, TH, W, Ct)    output strip (bf16)
    """
    _, TH, W, ct = o_ref.shape

    # Fold the three dx taps into K once per dy: (TH, W, 3*C), K order (dx, c).
    cats = []
    for r in (x0_ref, x1_ref, x2_ref):
        rows = r[0]                                       # (TH, W+2, C)
        cats.append(jnp.concatenate(
            [rows[:, 0:W, :], rows[:, 1:W + 1, :], rows[:, 2:W + 2, :]],
            axis=-1))

    if merge_taps:
        # Small-Cin path: fold dy into K as well -> single matmul, K = 9*C.
        patch = jnp.concatenate(cats, axis=-1)            # (TH, W, 9*C)
        acc = jnp.dot(patch.reshape(TH * W, patch.shape[-1]), w_ref[...],
                      preferred_element_type=jnp.float32)
    else:
        # Large-Cin path: three matmuls (one per dy), K = 3*Cin_p each.
        k = cats[0].shape[-1]
        acc = jnp.zeros((TH * W, ct), jnp.float32)
        for dy in range(3):                               # static, unrolled
            acc = acc + jnp.dot(cats[dy].reshape(TH * W, k), w_ref[dy],
                                preferred_element_type=jnp.float32)

    y = acc * scale_ref[...] + bias_ref[...]              # BN (eval), f32
    y = jnp.maximum(y, 0.0)                               # ReLU
    o_ref[...] = y.reshape(1, TH, W, ct).astype(o_ref.dtype)


def _round_up(x, m):
    return (x + m - 1) // m * m


def _pick_row_strip(H, W):
    # Target ~M_TARGET output pixels (matmul M rows) per strip; never exceed
    # the image height.  Non-dividing H is handled by zero-row padding in the
    # wrapper, never by shrinking TH.
    th = max(1, (M_TARGET + W - 1) // W)
    return min(th, H)


def conv3x3_bn_relu(x_nchw, w_oihw, gamma, beta, running_mean, running_var,
                    eps=1e-5):
    """Fused Conv3x3(stride=1, pad=1, no bias) + BatchNorm(eval) + ReLU.

    x_nchw: (N, Cin, H, W) f32.  w_oihw: (Cout, Cin, 3, 3) (PyTorch layout).
    Returns (N, Cout, H, W) f32.
    """
    N, Cin, H, W = x_nchw.shape
    Cout = w_oihw.shape[0]
    w_hwio = jnp.transpose(w_oihw, (2, 3, 1, 0))          # (3, 3, Cin, Cout)

    small_cin = Cin <= SMALL_CIN
    C = Cin if small_cin else _round_up(Cin, LANES)       # kernel channel dim

    Cout_p = _round_up(Cout, LANES)
    Ct = 2 * LANES if Cout_p % (2 * LANES) == 0 else LANES
    n_ctiles = Cout_p // Ct

    TH = _pick_row_strip(H, W)
    Hp = _round_up(H, TH)
    n_strips = Hp // TH

    # Fold BN (inference) into per-channel scale/bias, lane-padded, f32.
    scale = (gamma / jnp.sqrt(running_var + eps)).astype(jnp.float32)
    bias = (beta - running_mean * scale).astype(jnp.float32)
    scale_p = jnp.pad(scale, (0, Cout_p - Cout)).reshape(1, Cout_p)
    bias_p = jnp.pad(bias, (0, Cout_p - Cout)).reshape(1, Cout_p)

    # NCHW -> NHWC bf16, single fused pad: 1-px W halo, top halo + bottom
    # halo + row-strip tail padding, channel padding (large-Cin path only).
    x_nhwc = jnp.transpose(x_nchw, (0, 2, 3, 1)).astype(jnp.bfloat16)
    x_pad = jnp.pad(x_nhwc, ((0, 0), (1, Hp - H + 1), (1, 1), (0, C - Cin)))
    # Three dy-shifted views -> non-overlapping TH-row blocks per strip.
    x0 = x_pad[:, 0:Hp]
    x1 = x_pad[:, 1:Hp + 1]
    x2 = x_pad[:, 2:Hp + 2]

    # Weights: HWIO, pad channels, fold taps into K.
    w_p = jnp.pad(w_hwio.astype(jnp.bfloat16),
                  ((0, 0), (0, 0), (0, C - Cin), (0, Cout_p - Cout)))
    if small_cin:
        w_k = w_p.reshape(9 * C, Cout_p)                  # K order (dy, dx, c)
        w_spec = pl.BlockSpec((9 * C, Ct), lambda n, j, i: (0, j))
    else:
        w_k = w_p.reshape(3, 3 * C, Cout_p)               # per-dy, K = (dx, c)
        w_spec = pl.BlockSpec((3, 3 * C, Ct), lambda n, j, i: (0, 0, j))

    x_spec = pl.BlockSpec((1, TH, W + 2, C), lambda n, j, i: (n, i, 0, 0))
    sb_spec = pl.BlockSpec((1, Ct), lambda n, j, i: (0, j))

    kernel = functools.partial(_conv3x3_bn_relu_kernel, merge_taps=small_cin)

    out_nhwc = pl.pallas_call(
        kernel,
        out_shape=jax.ShapeDtypeStruct((N, Hp, W, Cout_p), jnp.bfloat16),
        grid_spec=pltpu.PrefetchScalarGridSpec(
            num_scalar_prefetch=0,
            # Cout-tile axis OUTER: weights/scale/bias stay resident across
            # all row strips; input strips stream (and are only re-streamed
            # when Cout_p > Ct, which is the cheap direction for conv).
            grid=(N, n_ctiles, n_strips),
            in_specs=[x_spec, x_spec, x_spec, w_spec, sb_spec, sb_spec],
            out_specs=pl.BlockSpec((1, TH, W, Ct),
                                   lambda n, j, i: (n, i, 0, j)),
        ),
        compiler_params=pltpu.CompilerParams(
            dimension_semantics=("parallel", "parallel", "parallel")),
    )(x0, x1, x2, w_k, scale_p, bias_p)

    # Drop row / channel padding, back to NCHW f32 (interface parity).
    out = out_nhwc[:, :H, :, :Cout].astype(jnp.float32)
    return jnp.transpose(out, (0, 3, 1, 2))


def _reference(x_nchw, w_oihw, gamma, beta, running_mean, running_var,
               eps=1e-5):
    w_hwio = jnp.transpose(w_oihw, (2, 3, 1, 0)).astype(jnp.float32)
    x_nhwc = jnp.transpose(x_nchw, (0, 2, 3, 1)).astype(jnp.float32)
    y = lax.conv_general_dilated(
        x_nhwc, w_hwio, window_strides=(1, 1), padding="SAME",
        dimension_numbers=("NHWC", "HWIO", "NHWC"))
    scale = gamma / jnp.sqrt(running_var + eps)
    bias = beta - running_mean * scale
    y = jnp.maximum(y * scale + bias, 0.0)
    return jnp.transpose(y, (0, 3, 1, 2))


if __name__ == "__main__":
    keys = jax.random.split(jax.random.PRNGKey(0), 12)

    # ---- primary test: small-Cin path (Cin=4 -> all 9 taps folded into K) --
    N, Cin, H, W = 2, 4, 16, 16
    Cout = 8
    x = jax.random.normal(keys[0], (N, Cin, H, W), dtype=jnp.float32)
    w = 0.1 * jax.random.normal(keys[1], (Cout, Cin, 3, 3), dtype=jnp.float32)
    gamma = 1.0 + 0.1 * jax.random.normal(keys[2], (Cout,), dtype=jnp.float32)
    beta = 0.1 * jax.random.normal(keys[3], (Cout,), dtype=jnp.float32)
    rmean = 0.1 * jax.random.normal(keys[4], (Cout,), dtype=jnp.float32)
    rvar = jnp.abs(jax.random.normal(keys[5], (Cout,), dtype=jnp.float32)) + 0.5

    out = jax.block_until_ready(conv3x3_bn_relu(x, w, gamma, beta, rmean, rvar))
    ref = _reference(x, w, gamma, beta, rmean, rvar)
    assert out.shape == (N, Cout, H, W)
    # bf16 matmul operands + bf16 store (f32 accumulate) -> relaxed tolerance.
    assert jnp.allclose(out, ref, rtol=5e-2, atol=5e-2), "small-Cin mismatch"

    # ---- secondary test: large-Cin path + non-dividing H (padded tail) ----
    N2, Cin2, H2, W2, Cout2 = 1, 40, 20, 16, 24
    x2 = jax.random.normal(keys[6], (N2, Cin2, H2, W2), dtype=jnp.float32)
    w2 = 0.1 * jax.random.normal(keys[7], (Cout2, Cin2, 3, 3), dtype=jnp.float32)
    g2 = 1.0 + 0.1 * jax.random.normal(keys[8], (Cout2,), dtype=jnp.float32)
    b2 = 0.1 * jax.random.normal(keys[9], (Cout2,), dtype=jnp.float32)
    m2 = 0.1 * jax.random.normal(keys[10], (Cout2,), dtype=jnp.float32)
    v2 = jnp.abs(jax.random.normal(keys[11], (Cout2,), dtype=jnp.float32)) + 0.5

    out2 = jax.block_until_ready(conv3x3_bn_relu(x2, w2, g2, b2, m2, v2))
    ref2 = _reference(x2, w2, g2, b2, m2, v2)
    assert out2.shape == (N2, Cout2, H2, W2)
    assert jnp.allclose(out2, ref2, rtol=5e-2, atol=5e-2), "large-Cin mismatch"

    print("KERNEL_OK")
</pallas_src>

<mosaic_0001>
module attributes {stable_mosaic.version = 11 : i64} {
  func.func @_conv3x3_bn_relu_kernel(%arg0: i32, %arg1: i32, %arg2: i32, %arg3: memref<1x16x18x4xbf16, #tpu.memory_space<vmem>>, %arg4: memref<1x16x18x4xbf16, #tpu.memory_space<vmem>>, %arg5: memref<1x16x18x4xbf16, #tpu.memory_space<vmem>>, %arg6: memref<36x128xbf16, #tpu.memory_space<vmem>>, %arg7: memref<1x128xf32, #tpu.memory_space<vmem>>, %arg8: memref<1x128xf32, #tpu.memory_space<vmem>>, %arg9: memref<1x16x16x128xbf16, #tpu.memory_space<vmem>>) attributes {dimension_semantics = [#tpu.dimension_semantics<parallel>, #tpu.dimension_semantics<parallel>, #tpu.dimension_semantics<parallel>], iteration_bounds = array<i64: 2, 1, 1>, scalar_prefetch = 0 : i64, scratch_operands = 0 : i64, tpu.core_type = #tpu.core_type<tc>, window_params = [{transform_indices = @transform_0, window_bounds = array<i64: 1, 16, 18, 4>}, {transform_indices = @transform_1, window_bounds = array<i64: 1, 16, 18, 4>}, {transform_indices = @transform_2, window_bounds = array<i64: 1, 16, 18, 4>}, {transform_indices = @transform_3, window_bounds = array<i64: 36, 128>}, {transform_indices = @transform_4, window_bounds = array<i64: 1, 128>}, {transform_indices = @transform_5, window_bounds = array<i64: 1, 128>}, {transform_indices = @transform_6, window_bounds = array<i64: 1, 16, 16, 128>}]} {
    %c0 = arith.constant 0 : index
    %c0_0 = arith.constant 0 : index
    %c0_1 = arith.constant 0 : index
    %c0_2 = arith.constant 0 : index
    %0 = vector.load %arg3[%c0, %c0_0, %c0_1, %c0_2] : memref<1x16x18x4xbf16, #tpu.memory_space<vmem>>, vector<1x16x18x4xbf16>
    %1 = vector.shape_cast %0 : vector<1x16x18x4xbf16> to vector<16x18x4xbf16>
    %2 = vector.extract_strided_slice %1 {offsets = [0, 0, 0], sizes = [16, 16, 4], strides = [1, 1, 1]} : vector<16x18x4xbf16> to vector<16x16x4xbf16>
    %3 = vector.extract_strided_slice %1 {offsets = [0, 1, 0], sizes = [16, 16, 4], strides = [1, 1, 1]} : vector<16x18x4xbf16> to vector<16x16x4xbf16>
    %4 = vector.extract_strided_slice %1 {offsets = [0, 2, 0], sizes = [16, 16, 4], strides = [1, 1, 1]} : vector<16x18x4xbf16> to vector<16x16x4xbf16>
    %5 = tpu.concatenate %2, %3, %4 in 2 : vector<16x16x4xbf16>, vector<16x16x4xbf16>, vector<16x16x4xbf16> -> vector<16x16x12xbf16>
    %c0_3 = arith.constant 0 : index
    %c0_4 = arith.constant 0 : index
    %c0_5 = arith.constant 0 : index
    %c0_6 = arith.constant 0 : index
    %6 = vector.load %arg4[%c0_3, %c0_4, %c0_5, %c0_6] : memref<1x16x18x4xbf16, #tpu.memory_space<vmem>>, vector<1x16x18x4xbf16>
    %7 = vector.shape_cast %6 : vector<1x16x18x4xbf16> to vector<16x18x4xbf16>
    %8 = vector.extract_strided_slice %7 {offsets = [0, 0, 0], sizes = [16, 16, 4], strides = [1, 1, 1]} : vector<16x18x4xbf16> to vector<16x16x4xbf16>
    %9 = vector.extract_strided_slice %7 {offsets = [0, 1, 0], sizes = [16, 16, 4], strides = [1, 1, 1]} : vector<16x18x4xbf16> to vector<16x16x4xbf16>
    %10 = vector.extract_strided_slice %7 {offsets = [0, 2, 0], sizes = [16, 16, 4], strides = [1, 1, 1]} : vector<16x18x4xbf16> to vector<16x16x4xbf16>
    %11 = tpu.concatenate %8, %9, %10 in 2 : vector<16x16x4xbf16>, vector<16x16x4xbf16>, vector<16x16x4xbf16> -> vector<16x16x12xbf16>
    %c0_7 = arith.constant 0 : index
    %c0_8 = arith.constant 0 : index
    %c0_9 = arith.constant 0 : index
    %c0_10 = arith.constant 0 : index
    %12 = vector.load %arg5[%c0_7, %c0_8, %c0_9, %c0_10] : memref<1x16x18x4xbf16, #tpu.memory_space<vmem>>, vector<1x16x18x4xbf16>
    %13 = vector.shape_cast %12 : vector<1x16x18x4xbf16> to vector<16x18x4xbf16>
    %14 = vector.extract_strided_slice %13 {offsets = [0, 0, 0], sizes = [16, 16, 4], strides = [1, 1, 1]} : vector<16x18x4xbf16> to vector<16x16x4xbf16>
    %15 = vector.extract_strided_slice %13 {offsets = [0, 1, 0], sizes = [16, 16, 4], strides = [1, 1, 1]} : vector<16x18x4xbf16> to vector<16x16x4xbf16>
    %16 = vector.extract_strided_slice %13 {offsets = [0, 2, 0], sizes = [16, 16, 4], strides = [1, 1, 1]} : vector<16x18x4xbf16> to vector<16x16x4xbf16>
    %17 = tpu.concatenate %14, %15, %16 in 2 : vector<16x16x4xbf16>, vector<16x16x4xbf16>, vector<16x16x4xbf16> -> vector<16x16x12xbf16>
    %18 = tpu.concatenate %5, %11, %17 in 2 : vector<16x16x12xbf16>, vector<16x16x12xbf16>, vector<16x16x12xbf16> -> vector<16x16x36xbf16>
    %19 = vector.shape_cast %18 : vector<16x16x36xbf16> to vector<256x36xbf16>
    %c0_11 = arith.constant 0 : index
    %c0_12 = arith.constant 0 : index
    %20 = vector.load %arg6[%c0_11, %c0_12] : memref<36x128xbf16, #tpu.memory_space<vmem>>, vector<36x128xbf16>
    %cst = arith.constant dense<0.000000e+00> : vector<256x128xf32>
    %21 = tpu.matmul %19, %20, %cst {dimension_numbers = #tpu.dot_dimension_numbers<[1], [0], [0], [1], [0, 0, 1, 1], [], []>} : vector<256x36xbf16>, vector<36x128xbf16>, vector<256x128xf32> -> vector<256x128xf32>
    %c0_13 = arith.constant 0 : index
    %c0_14 = arith.constant 0 : index
    %22 = vector.load %arg7[%c0_13, %c0_14] : memref<1x128xf32, #tpu.memory_space<vmem>>, vector<1x128xf32>
    %23 = vector.broadcast %22 : vector<1x128xf32> to vector<256x128xf32>
    %24 = arith.mulf %21, %23 : vector<256x128xf32>
    %c0_15 = arith.constant 0 : index
    %c0_16 = arith.constant 0 : index
    %25 = vector.load %arg8[%c0_15, %c0_16] : memref<1x128xf32, #tpu.memory_space<vmem>>, vector<1x128xf32>
    %26 = vector.broadcast %25 : vector<1x128xf32> to vector<256x128xf32>
    %27 = arith.addf %24, %26 : vector<256x128xf32>
    %cst_17 = arith.constant 0.000000e+00 : f32
    %28 = vector.broadcast %cst_17 : f32 to vector<256x128xf32>
    %29 = arith.maximumf %27, %28 : vector<256x128xf32>
    %30 = vector.shape_cast %29 : vector<256x128xf32> to vector<1x16x16x128xf32>
    %31 = arith.truncf %30 : vector<1x16x16x128xf32> to vector<1x16x16x128xbf16>
    %c0_18 = arith.constant 0 : index
    %c0_19 = arith.constant 0 : index
    %c0_20 = arith.constant 0 : index
    %c0_21 = arith.constant 0 : index
    %32 = vector.load %arg9[%c0_18, %c0_19, %c0_20, %c0_21] : memref<1x16x16x128xbf16, #tpu.memory_space<vmem>>, vector<1x16x16x128xbf16>
    tpu.vector_store %arg9[%c0_18, %c0_19, %c0_20, %c0_21], %31 {strides = array<i32>} : memref<1x16x16x128xbf16, #tpu.memory_space<vmem>>, vector<1x16x16x128xbf16>,
    return
  }
  func.func @transform_0(%arg0: i32, %arg1: i32, %arg2: i32) -> (i32, i32, i32, i32) {
    %c0_i32 = arith.constant 0 : i32
    %c0_i32_0 = arith.constant 0 : i32
    %c0_i32_1 = arith.constant 0 : i32
    return %arg0, %arg2, %c0_i32, %c0_i32_0 : i32, i32, i32, i32
  }
  func.func @transform_1(%arg0: i32, %arg1: i32, %arg2: i32) -> (i32, i32, i32, i32) {
    %c0_i32 = arith.constant 0 : i32
    %c0_i32_0 = arith.constant 0 : i32
    %c0_i32_1 = arith.constant 0 : i32
    return %arg0, %arg2, %c0_i32, %c0_i32_0 : i32, i32, i32, i32
  }
  func.func @transform_2(%arg0: i32, %arg1: i32, %arg2: i32) -> (i32, i32, i32, i32) {
    %c0_i32 = arith.constant 0 : i32
    %c0_i32_0 = arith.constant 0 : i32
    %c0_i32_1 = arith.constant 0 : i32
    return %arg0, %arg2, %c0_i32, %c0_i32_0 : i32, i32, i32, i32
  }
  func.func @transform_3(%arg0: i32, %arg1: i32, %arg2: i32) -> (i32, i32) {
    %c0_i32 = arith.constant 0 : i32
    %c0_i32_0 = arith.constant 0 : i32
    return %c0_i32, %arg1 : i32, i32
  }
  func.func @transform_4(%arg0: i32, %arg1: i32, %arg2: i32) -> (i32, i32) {
    %c0_i32 = arith.constant 0 : i32
    %c0_i32_0 = arith.constant 0 : i32
    return %c0_i32, %arg1 : i32, i32
  }
  func.func @transform_5(%arg0: i32, %arg1: i32, %arg2: i32) -> (i32, i32) {
    %c0_i32 = arith.constant 0 : i32
    %c0_i32_0 = arith.constant 0 : i32
    return %c0_i32, %arg1 : i32, i32
  }
  func.func @transform_6(%arg0: i32, %arg1: i32, %arg2: i32) -> (i32, i32, i32, i32) {
    %c0_i32 = arith.constant 0 : i32
    %c0_i32_0 = arith.constant 0 : i32
    return %arg0, %arg2, %c0_i32, %arg1 : i32, i32, i32, i32
  }
}

</mosaic_0001>

<bundles_post_ra>
// kernel: tpu_custom_call.1
= control target key start
LH: loop header
LB: loop body
LE: loop exit
PB: predicated region body
PF: predicated region fallthrough
CT: control target
= control target key end

     0   :  { %11 = vsyncpa [#allocation3], 0  ;;  %s4792_s0 = inlined_call_operand.vmem [shape: bf16[2,16,18,4], index: 0, kind: input, shape index: {}]   ;;  %s4793_s1 = inlined_call_operand.vmem [shape: bf16[2,16,18,4], index: 1, kind: input, shape index: {}]   ;;  %s4794_s2 = inlined_call_operand.vmem [shape: bf16[2,16,18,4], index: 2, kind: input, shape index: {}]   ;;  %s4795_s3 = inlined_call_operand.vmem [shape: bf16[36,128], index: 3, kind: input, shape index: {}]   ;;  %s4796_s4 = inlined_call_operand.vmem [shape: f32[1,128], index: 4, kind: input, shape index: {}]   ;;  %s4797_s5 = inlined_call_operand.vmem [shape: f32[1,128], index: 5, kind: input, shape index: {}]   ;;  %s4798_s6 = inlined_call_operand.hbm [shape: bf16[2,16,16,128], index: 6, kind: output, shape index: {}]  }
   0x1   :  { %13 = vsyncpa [#allocation3 + $0x1], 0  ;;  %s3556_s21 = smov 0   ;;  %s3558_s22 = smov 0  }
   0x2   :  { %s3560_s23 = smov 0   ;;  %s3562_s24 = smov 0  }
   0x3   :  { %s3564_s25 = smov 0   ;;  %s3566_s26 = smov 0  }
   0x4 LB: > { %s2888_s27 = sadd.s32 4294967295, %s3513_s26   ;;  %s2889_s28 = sadd.s32 4294967294, %s3513_s26   ;;  %s3513_s26 = sphi %s3566_s26, %s19_s26   ;;  %s3509_s25 = sphi %s3564_s25, %s4805_s25   ;;  %s3505_s24 = sphi %s3562_s24, %s4804_s24   ;;  %s3501_s23 = sphi %s3560_s23, %s4803_s23   ;;  %s3497_s22 = sphi %s3558_s22, %s4802_s22   ;;  %s3493_s21 = sphi %s3556_s21, %s4801_s21  }
   0x5   : > { %s38_s29 = sadd.s32 1, %s3509_s25  ;;  %s211_s30 = sadd.s32 1, %s3501_s23 }
   0x6   : > { %p40_p0 = scmp.ge.s32.totalorder %s38_s29, 2  ;;  %p221_p1 = scmp.ne.s32.totalorder %s3501_s23, %s3497_s22 }
   0x7   : > { %p222_p2 = scmp.eq.s32.totalorder %s2888_s27, 1  ;;  %p227_p3 = scmp.ne.s32.totalorder %s3497_s22, %s3493_s21 }
   0x8   : > { %s4807_s29 = smov (%p40_p0, %s38_s29), 0  ;;  %p228_p5 = scmp.eq.s32.totalorder %s2889_s28, 1 }
   0x9   : > { %p3596_p4 = por %p222_p2, %p221_p1  ;;  %s204_s8 = ssub.s32 %s3509_s25, %s4807_s29 }
   0xa   : > { %p2895_p6 = scmp.ge.s32.totalorder %s3513_s26, 1  ;;  %p209_p7 = scmp.eq.s32.totalorder %s204_s8, 0 }
   0xb   : > { %p3603_p8 = por %p228_p5, %p227_p3  ;;  %p307_p9 = scmp.lt.s32.totalorder %s3513_s26, 3 }
   0xc   : > { %s3609_s10 = scalar_select %p209_p7, %s3501_s23, %s211_s30  }
   0xd   : > { %p308_p10 = pnand %p2895_p6, %p307_p9 }
   0xe   : > { %p373_p11 = scmp.lt.s32.totalorder (!%p308_p10), %s3505_s24, 1  ;;  %s3515_s16 = smov (!%p308_p10), 8  }
   0xf   : > { %311 = sbr.rel (%p308_p10) target bundleno = 619 (0x26b), region = 44  ;;  %s3516_s20 = smov (!%p308_p10), 4  }
  0x10   : > { %s3517_s18 = smov (!%p308_p10), 12   ;;  %s3518_s27 = smov (!%p308_p10), 24  }
  0x14   : > { %s374_s11 = scalar_select %p373_p11, %s3505_s24, 1  ;;  %vm818_vm0 = vcmask 1046528   ;;  %vm593_vm1 = vsmask.f32 7424  ;;  %vm2268_vm2 = vcmask 1041408   ;;  %vm899_vm3 = vcmask 31744  }
  0x15   : > { %vm932_vm4 = vcmask 64512   ;;  %vm2149_vm5 = vcmask 97280   ;;  %vm2182_vm6 = vcmask 195584   ;;  %vm2235_vm7 = vcmask 293888  }
  0x16   : > { %s3613_s12 = smul.u32 192, %s374_s11 }
  0x18   : > { %s3619_s15 = scalar_lea.vmem %s4793_s1, %s3613_s12  ;;  %s3637_s19 = scalar_lea.vmem %s4794_s2, %s3613_s12 }
  0x19   : > { %v3622_v0 = vld [vmem:[%s3619_s15 + $0x60] sm:$0xff]   ;;  %v3309_v1 = vld [vmem:[%s3619_s15 + $0x68] ss:$0 sps:$4 sm:$0x11]   ;;  %v3312_v6 = vld [vmem:[%s3619_s15 + $0x6c] sm:$0xff]   ;;  %s3955_s30 = scalar_lea.vmem %s4792_s0, %s3613_s12  ;;  %s3086_s12 = sshll.u32 %s3505_s24, 11 }
  0x1a   : > { %v3310_v2 = vld [vmem:[%s3619_s15] sm:$0xff]   ;;  %v1389_v3 = vrot.slane %v3622_v0, 1  ;;  %v1390_v4 = vrot.slane %v3309_v1, 1  ;;  %v3311_v5 = vld [vmem:[%s3619_s15 + $0x8] ss:$0 sps:$4 sm:$0x11]  }
  0x1b   : > { %v1365_v7 = vrot.slane %v3310_v2, 1  ;;  %v3314_v8 = vld [vmem:[%s3619_s15 + $0xc] sm:$0xff]   ;;  %v1366_v10 = vrot.slane %v3311_v5, 1  ;;  %v3313_v11 = vld [vmem:[%s3619_s15 + $0x74] ss:$0 sps:$4 sm:$0x11]  }
  0x1c   : > { %v1391_v9 = vsel %vm818_vm0, %v1389_v3, %v1390_v4  ;;  %v1392_v12 = vrot.slane %v3312_v6, 1  ;;  %v1368_v13 = vrot.slane %v3314_v8, 1  ;;  %v1393_v15 = vrot.slane %v3313_v11, 1  ;;  %v3315_v16 = vld [vmem:[%s3619_s15 + $0x14] ss:$0 sps:$4 sm:$0x11]  }
  0x1d   : > { %1429 = vrot.lane.b32.xlu1 %v1391_v9, %s3515_s16  ;;  %v1367_v14 = vsel %vm818_vm0, %v1365_v7, %v1366_v10  ;;  %v1154_v17 = vshrl.u32 %v3314_v8, 16  ;;  %v1156_v18 = vshll.u32 %v3314_v8, 16  ;;  %v1142_v19 = vshrl.u32 %v3310_v2, 16  ;;  %v3644_v25 = vld [vmem:[%s3637_s19 + $0x60] sm:$0xff]   ;;  %v3665_v49 = vld [vmem:[%s3637_s19 + $0x6c] sm:$0xff]  }
  0x1e   : > { %1413 = vrot.lane.b32.xlu0 %v1367_v14, %s3515_s16  ;;  %v1144_v20 = vshll.u32 %v3310_v2, 16  ;;  %v1394_v21 = vsel %vm818_vm0, %v1392_v12, %v1393_v15  ;;  %v1369_v22 = vrot.slane %v3315_v16, 1  ;;  %v1161_v23 = vshll.u32 %v3315_v16, 16  ;;  %v3649_v34 = vld [vmem:[%s3637_s19 + $0x68] ss:$0 sps:$4 sm:$0x11]  }
  0x1f   : > { %v1149_v24 = vshll.u32 %v3311_v5, 16  ;;  %v1158_v26 = vrot.slane %v1156_v18, 1  ;;  %v1250_v28 = vshrl.u32 %v3312_v6, 16  ;;  %v1252_v29 = vshll.u32 %v3312_v6, 16  ;;  %v3659_v47 = vld [vmem:[%s3637_s19] sm:$0xff]   ;;  %v3670_v53 = vld [vmem:[%s3637_s19 + $0xc] sm:$0xff]  }
  0x20   : > { %v1146_v27 = vrot.slane %v1144_v20, 1  ;;  %v1370_v30 = vsel %vm818_vm0, %v1368_v13, %v1369_v22  ;;  %v1163_v31 = vrot.slane %v1161_v23, 1  ;;  %v1257_v33 = vshll.u32 %v3313_v11, 16  ;;  %v3662_v48 = vld [vmem:[%s3637_s19 + $0x8] ss:$0 sps:$4 sm:$0x11]  }
  0x21   : > { %1431 = vrot.lane.b32.xlu1 %v1394_v21, %s3515_s16  ;;  %v1151_v32 = vrot.slane %v1149_v24, 1  ;;  %v1159_v35 = vor.u32 %v1158_v26, %v1154_v17  ;;  %v1254_v37 = vrot.slane %v1252_v29, 1  ;;  %v1238_v38 = vshrl.u32 %v3622_v0, 16  ;;  %v3323_v10 = vld [vmem:[%s3637_s19 + $0x14] ss:$0 sps:$4 sm:$0x11]  }
  0x22   : > { %1415 = vrot.lane.b32.xlu0 %v1370_v30, %s3515_s16  ;;  %v1147_v36 = vor.u32 %v1146_v27, %v1142_v19  ;;  %v1259_v39 = vrot.slane %v1257_v33, 1  ;;  %v1240_v40 = vshll.u32 %v3622_v0, 16  ;;  %v1245_v41 = vshll.u32 %v3309_v1, 16  ;;  %v3321_v0 = vld [vmem:[%s3637_s19 + $0x74] ss:$0 sps:$4 sm:$0x11]  }
  0x23   : > { %v1782_v42 = vshrl.u32 %v3644_v25, 16  ;;  %v1164_v43 = vsel %vm593_vm1, %v1159_v35, %v1163_v31  ;;  %v1255_v45 = vor.u32 %v1254_v37, %v1250_v28  ;;  %v1784_v46 = vshll.u32 %v3644_v25, 16  ;;  %v3689_v15 = vld [vmem:[%s3619_s15 + $0x78] sm:$0xff]   ;;  %v3694_v19 = vld [vmem:[%s3619_s15 + $0x80] ss:$0 sps:$4 sm:$0x11]  }
  0x24   : > { %v1152_v44 = vsel %vm593_vm1, %v1147_v36, %v1151_v32  ;;  %v1242_v50 = vrot.slane %v1240_v40, 1  ;;  %v1247_v51 = vrot.slane %v1245_v41, 1  ;;  %v1789_v52 = vshll.u32 %v3649_v34, 16  ;;  %v3697_v20 = vld [vmem:[%s3619_s15 + $0x18] sm:$0xff]   ;;  %v3705_v26 = vld [vmem:[%s3619_s15 + $0x84] sm:$0xff]  }
  0x25   : > { %1335 = vrot.lane.b32.xlu1 %v1164_v43, %s3516_s20  ;;  %v1260_v54 = vsel %vm593_vm1, %v1255_v45, %v1259_v39  ;;  %v1786_v55 = vrot.slane %v1784_v46, 1  ;;  %v1686_v56 = vshrl.u32 %v3659_v47, 16  ;;  %v1688_v57 = vshll.u32 %v3659_v47, 16  ;;  %v3712_v33 = vld [vmem:[%s3619_s15 + $0x24] sm:$0xff]  }
  0x26   : > { %1333 = vrot.lane.b32.xlu0 %v1152_v44, %s3516_s20  ;;  %v1243_v58 = vor.u32 %v1242_v50, %v1238_v38  ;;  %v1791_v59 = vrot.slane %v1789_v52, 1  ;;  %v1693_v60 = vshll.u32 %v3662_v48, 16  ;;  %v1794_v61 = vshrl.u32 %v3665_v49, 16  ;;  %v3717_v35 = vld [vmem:[%s3619_s15 + $0x20] ss:$0 sps:$4 sm:$0x11]  }
  0x27   : > { %v1787_v62 = vor.u32 %v1786_v55, %v1782_v42  ;;  %v1690_v63 = vrot.slane %v1688_v57, 1  ;;  %v1796_v1 = vshll.u32 %v3665_v49, 16  ;;  %v1698_v2 = vshrl.u32 %v3670_v53, 16  ;;  %v3727_v44 = vld [vmem:[%s3619_s15 + $0x8c] ss:$0 sps:$4 sm:$0x11]  }
  0x28   : > { %v1248_v3 = vsel %vm593_vm1, %v1243_v58, %v1247_v51  ;;  %v1695_v4 = vrot.slane %v1693_v60, 1  ;;  %v1700_v5 = vshll.u32 %v3670_v53, 16  ;;  %v1801_v9 = vshll.u32 %v3321_v0, 16  ;;  %v3735_v50 = vld [vmem:[%s3637_s19 + $0x78] sm:$0xff]  }
  0x29   : > { %1351 = vrot.lane.b32.xlu1 %v1260_v54, %s3516_s20  ;;  %v1792_v6 = vsel %vm593_vm1, %v1787_v62, %v1791_v59  ;;  %v1691_v7 = vor.u32 %v1690_v63, %v1686_v56  ;;  %v1798_v8 = vrot.slane %v1796_v1, 1  ;;  %v1705_v17 = vshll.u32 %v3323_v10, 16  ;;  %v3741_v55 = vld [vmem:[%s3619_s15 + $0x2c] ss:$0 sps:$4 sm:$0x11]   ;;  %v3745_v60 = vld [vmem:[%s3637_s19 + $0x18] sm:$0xff]  }
  0x2a   : > { %1349 = vrot.lane.b32.xlu0 %v1248_v3, %s3516_s20  ;;  %v1702_v11 = vrot.slane %v1700_v5, 1  ;;  %v1803_v14 = vrot.slane %v1801_v9, 1  ;;  %v1933_v18 = vrot.slane %v3644_v25, 1  ;;  %v1934_v22 = vrot.slane %v3649_v34, 1 }
  0x2b   : > { %v1696_v12 = vsel %vm593_vm1, %v1691_v7, %v1695_v4  ;;  %v1799_v13 = vor.u32 %v1798_v8, %v1794_v61  ;;  %v1909_v23 = vrot.slane %v3659_v47, 1  ;;  %v1910_v24 = vrot.slane %v3662_v48, 1  ;;  %v3750_v62 = vld [vmem:[%s3637_s19 + $0x80] ss:$0 sps:$4 sm:$0x11]  }
  0x2c   : > { %v1703_v16 = vor.u32 %v1702_v11, %v1698_v2  ;;  %v1707_v27 = vrot.slane %v1705_v17, 1  ;;  %v1936_v25 = vrot.slane %v3665_v49, 1  ;;  %v1937_v28 = vrot.slane %v3321_v0, 1  ;;  %v3764_v11 = vld [vmem:[%s3637_s19 + $0x84] sm:$0xff]  }
  0x2d   : > { %1893 = vrot.lane.b32.xlu1 %v1792_v6, %s3516_s20  ;;  %v1804_v21 = vsel %vm593_vm1, %v1799_v13, %v1803_v14  ;;  %v1912_v29 = vrot.slane %v3670_v53, 1  ;;  %v1913_v30 = vrot.slane %v3323_v10, 1  ;;  %v1264_v31 = vshll.u32 %v3689_v15, 16  ;;  %v3761_v10 = vld [vmem:[%s3637_s19 + $0x20] ss:$0 sps:$4 sm:$0x11]  }
  0x2e   : > { %1877 = vrot.lane.b32.xlu0 %v1696_v12, %s3516_s20  ;;  %v1269_v32 = vshll.u32 %v3694_v19, 16  ;;  %v1708_v34 = vsel %vm593_vm1, %v1703_v16, %v1707_v27  ;;  %v1168_v36 = vshll.u32 %v3697_v20, 16  ;;  %v1935_v37 = vsel %vm818_vm0, %v1933_v18, %v1934_v22  ;;  %v3774_v18 = vld [vmem:[%s3637_s19 + $0x24] sm:$0xff]  }
  0x2f   : > { %v1262_v38 = vshrl.u32 %v3689_v15, 16  ;;  %v1266_v39 = vrot.slane %v1264_v31, 1  ;;  %v1911_v40 = vsel %vm818_vm0, %v1909_v23, %v1910_v24  ;;  %v1166_v41 = vshrl.u32 %v3697_v20, 16  ;;  %v3780_v23 = vld [vmem:[%s3637_s19 + $0x8c] ss:$0 sps:$4 sm:$0x11]  }
  0x30   : > { %v1170_v42 = vrot.slane %v1168_v36, 1  ;;  %v1173_v43 = vshll.u32 %v3717_v35, 16  ;;  %v1276_v45 = vshll.u32 %v3705_v26, 16  ;;  %v1938_v46 = vsel %vm818_vm0, %v1936_v25, %v1937_v28  ;;  %v3786_v28 = vld [vmem:[%s3637_s19 + $0x2c] ss:$0 sps:$4 sm:$0x11]  }
  0x31   : > { %1895 = vrot.lane.b32.xlu1 %v1804_v21, %s3516_s20  ;;  %v1914_v47 = vsel %vm818_vm0, %v1912_v29, %v1913_v30  ;;  %v1271_v48 = vrot.slane %v1269_v32, 1  ;;  %v1180_v49 = vshll.u32 %v3712_v33, 16  ;;  %v1267_v51 = vor.u32 %v1266_v39, %v1262_v38 }
  0x32   : > { %1879 = vrot.lane.b32.xlu0 %v1708_v34, %s3516_s20  ;;  %v1274_v52 = vshrl.u32 %v3705_v26, 16  ;;  %v1278_v53 = vrot.slane %v1276_v45, 1  ;;  %v1281_v54 = vshll.u32 %v3727_v44, 16  ;;  %v1171_v56 = vor.u32 %v1170_v42, %v1166_v41 }
  0x33   : > { %v1175_v57 = vrot.slane %v1173_v43, 1  ;;  %v1178_v58 = vshrl.u32 %v3712_v33, 16  ;;  %v1182_v59 = vrot.slane %v1180_v49, 1  ;;  %v1185_v61 = vshll.u32 %v3741_v55, 16 }
  0x34   : > { %v1272_v63 = vsel %vm593_vm1, %v1267_v51, %v1271_v48  ;;  %v1279_v0 = vor.u32 %v1278_v53, %v1274_v52  ;;  %v1283_v1 = vrot.slane %v1281_v54, 1  ;;  %v1808_v2 = vshll.u32 %v3735_v50, 16  ;;  %v3809_v48 = vld [vmem:[%s3619_s15 + $0x30] sm:$0xff]  }
  0x35   : > { %1973 = vrot.lane.b32.xlu1 %v1935_v37, %s3515_s16  ;;  %v1176_v3 = vsel %vm593_vm1, %v1171_v56, %v1175_v57  ;;  %v1183_v4 = vor.u32 %v1182_v59, %v1178_v58  ;;  %v1187_v5 = vrot.slane %v1185_v61, 1  ;;  %v1712_v6 = vshll.u32 %v3745_v60, 16  ;;  %v3816_v56 = vld [vmem:[%s3619_s15 + $0x98] ss:$0 sps:$4 sm:$0x11]   ;;  %v3821_v58 = vld [vmem:[%s3619_s15 + $0x9c] sm:$0xff]  }
  0x36   : > { %1957 = vrot.lane.b32.xlu0 %v1911_v40, %s3515_s16  ;;  %v1395_v7 = vrot.slane %v3689_v15, 1  ;;  %v1396_v8 = vrot.slane %v3694_v19, 1  ;;  %v1371_v9 = vrot.slane %v3697_v20, 1  ;;  %v1372_v12 = vrot.slane %v3717_v35, 1 }
  0x37   : > { %v1813_v13 = vshll.u32 %v3750_v62, 16  ;;  %v1284_v14 = vsel %vm593_vm1, %v1279_v0, %v1283_v1  ;;  %v1806_v15 = vshrl.u32 %v3735_v50, 16  ;;  %v1810_v16 = vrot.slane %v1808_v2, 1  ;;  %v3826_v61 = vld [vmem:[%s3619_s15 + $0x38] ss:$0 sps:$4 sm:$0x11]  }
  0x38   : > { %v1710_v17 = vshrl.u32 %v3745_v60, 16  ;;  %v1188_v19 = vsel %vm593_vm1, %v1183_v4, %v1187_v5  ;;  %v1714_v20 = vrot.slane %v1712_v6, 1  ;;  %v1717_v21 = vshll.u32 %v3761_v10, 16  ;;  %v3834_v1 = vld [vmem:[%s3619_s15 + $0x3c] sm:$0xff]  }
  0x39   : > { %1975 = vrot.lane.b32.xlu1 %v1938_v46, %s3515_s16  ;;  %v1815_v22 = vrot.slane %v1813_v13, 1  ;;  %v1397_v24 = vsel %vm818_vm0, %v1395_v7, %v1396_v8  ;;  %v1811_v27 = vor.u32 %v1810_v16, %v1806_v15  ;;  %v1820_v25 = vshll.u32 %v3764_v11, 16  ;;  %v3843_v7 = vld [vmem:[%s3619_s15 + $0xa4] ss:$0 sps:$4 sm:$0x11]  }
  0x3a   : > { %1959 = vrot.lane.b32.xlu0 %v1914_v47, %s3515_s16  ;;  %v1373_v29 = vsel %vm818_vm0, %v1371_v9, %v1372_v12  ;;  %v1715_v30 = vor.u32 %v1714_v20, %v1710_v17  ;;  %v1719_v31 = vrot.slane %v1717_v21, 1  ;;  %v1724_v32 = vshll.u32 %v3774_v18, 16  ;;  %v3859_v21 = vld [vmem:[%s3637_s19 + $0x90] sm:$0xff]  }
  0x3b   : > { %v1398_v34 = vrot.slane %v3705_v26, 1  ;;  %v1399_v35 = vrot.slane %v3727_v44, 1  ;;  %v1374_v36 = vrot.slane %v3712_v33, 1  ;;  %v1375_v37 = vrot.slane %v3741_v55, 1  ;;  %v3804_v44 = vld [vmem:[%s3619_s15 + $0x90] sm:$0xff]  }
  0x3c   : > { %v1818_v38 = vshrl.u32 %v3764_v11, 16  ;;  %v1816_v39 = vsel %vm593_vm1, %v1811_v27, %v1815_v22  ;;  %v1822_v40 = vrot.slane %v1820_v25, 1  ;;  %v1825_v41 = vshll.u32 %v3780_v23, 16 }
  0x3d   : > { %1353 = vrot.lane.b32.xlu1 %v1272_v63, %s3516_s20  ;;  %v1720_v26 = vsel %vm593_vm1, %v1715_v30, %v1719_v31  ;;  %v1722_v42 = vshrl.u32 %v3774_v18, 16  ;;  %v1726_v43 = vrot.slane %v1724_v32, 1  ;;  %v1729_v33 = vshll.u32 %v3786_v28, 16  ;;  %v3866_v30 = vld [vmem:[%s3637_s19 + $0x30] sm:$0xff]  }
  0x3e   : > { %1337 = vrot.lane.b32.xlu0 %v1176_v3, %s3516_s20  ;;  %v1400_v45 = vsel %vm818_vm0, %v1398_v34, %v1399_v35  ;;  %v1823_v46 = vor.u32 %v1822_v40, %v1818_v38  ;;  %v1827_v47 = vrot.slane %v1825_v41, 1  ;;  %v1376_v49 = vsel %vm818_vm0, %v1374_v36, %v1375_v37  ;;  %v3870_v34 = vld [vmem:[%s3637_s19 + $0x98] ss:$0 sps:$4 sm:$0x11]  }
  0x3f   : > { %v1727_v51 = vor.u32 %v1726_v43, %v1722_v42  ;;  %v1731_v52 = vrot.slane %v1729_v33, 1  ;;  %v1939_v53 = vrot.slane %v3735_v50, 1  ;;  %v1940_v54 = vrot.slane %v3750_v62, 1  ;;  %v3876_v37 = vld [vmem:[%s3637_s19 + $0x38] ss:$0 sps:$4 sm:$0x11]  }
  0x40   : > { %v1915_v55 = vrot.slane %v3745_v60, 1  ;;  %v1288_v57 = vshll.u32 %v3804_v44, 16  ;;  %v1828_v59 = vsel %vm593_vm1, %v1823_v46, %v1827_v47  ;;  %v1192_v50 = vshll.u32 %v3809_v48, 16  ;;  %v3888_v47 = vld [vmem:[%s3637_s19 + $0x9c] sm:$0xff]  }
  0x41   : > { %1355 = vrot.lane.b32.xlu1 %v1284_v14, %s3516_s20  ;;  %v1732_v62 = vsel %vm593_vm1, %v1727_v51, %v1731_v52  ;;  %v1916_v60 = vrot.slane %v3761_v10, 1  ;;  %v1942_v63 = vrot.slane %v3764_v11, 1  ;;  %v1943_v0 = vrot.slane %v3780_v23, 1  ;;  %v3851_v14 = vld [vmem:[%s3619_s15 + $0x44] ss:$0 sps:$4 sm:$0x11]  }
  0x42   : > { %1339 = vrot.lane.b32.xlu0 %v1188_v19, %s3516_s20  ;;  %v1918_v2 = vrot.slane %v3774_v18, 1  ;;  %v1293_v3 = vshll.u32 %v3816_v56, 16  ;;  %v1941_v4 = vsel %vm818_vm0, %v1939_v53, %v1940_v54  ;;  %v1919_v5 = vrot.slane %v3786_v28, 1 }
  0x43   : > { %v1286_v6 = vshrl.u32 %v3804_v44, 16  ;;  %v1300_v8 = vshll.u32 %v3821_v58, 16  ;;  %v1290_v9 = vrot.slane %v1288_v57, 1  ;;  %v1190_v10 = vshrl.u32 %v3809_v48, 16 }
  0x44   : > { %v1194_v11 = vrot.slane %v1192_v50, 1  ;;  %v1197_v12 = vshll.u32 %v3826_v61, 16  ;;  %v1917_v13 = vsel %vm818_vm0, %v1915_v55, %v1916_v60  ;;  %v1204_v15 = vshll.u32 %v3834_v1, 16  ;;  %v3899_v55 = vld [vmem:[%s3637_s19 + $0xa4] ss:$0 sps:$4 sm:$0x11]  }
  0x45   : > { %1433 = vrot.lane.b32.xlu1 %v1397_v24, %s3515_s16  ;;  %v1295_v16 = vrot.slane %v1293_v3, 1  ;;  %v1298_v17 = vshrl.u32 %v3821_v58, 16  ;;  %v1302_v18 = vrot.slane %v1300_v8, 1  ;;  %v1305_v19 = vshll.u32 %v3843_v7, 16 }
  0x46   : > { %1417 = vrot.lane.b32.xlu0 %v1373_v29, %s3515_s16  ;;  %v1202_v20 = vshrl.u32 %v3834_v1, 16  ;;  %v1944_v22 = vsel %vm818_vm0, %v1942_v63, %v1943_v0  ;;  %v1920_v23 = vsel %vm818_vm0, %v1918_v2, %v1919_v5  ;;  %v1291_v24 = vor.u32 %v1290_v9, %v1286_v6  ;;  %v3907_v63 = vld [vmem:[%s3637_s19 + $0x44] ss:$0 sps:$4 sm:$0x11]  }
  0x47   : > { %v1195_v27 = vor.u32 %v1194_v11, %v1190_v10  ;;  %v1199_v25 = vrot.slane %v1197_v12, 1  ;;  %v1206_v28 = vrot.slane %v1204_v15, 1  ;;  %v1209_v29 = vshll.u32 %v3851_v14, 16 }
  0x48   : > { %v1303_v31 = vor.u32 %v1302_v18, %v1298_v17  ;;  %v1307_v32 = vrot.slane %v1305_v19, 1  ;;  %v1296_v35 = vsel %vm593_vm1, %v1291_v24, %v1295_v16  ;;  %v1832_v36 = vshll.u32 %v3859_v21, 16  ;;  %v3924_v16 = vld [vmem:[%s3619_s15 + $0xa8] sm:$0xff]  }
  0x49   : > { %1897 = vrot.lane.b32.xlu1 %v1816_v39, %s3516_s20  ;;  %v1200_v38 = vsel %vm593_vm1, %v1195_v27, %v1199_v25  ;;  %v1207_v39 = vor.u32 %v1206_v28, %v1202_v20  ;;  %v1211_v40 = vrot.slane %v1209_v29, 1  ;;  %v1736_v41 = vshll.u32 %v3866_v30, 16  ;;  %v3930_v17 = vld [vmem:[%s3619_s15 + $0x48] sm:$0xff]  }
  0x4a   : > { %1881 = vrot.lane.b32.xlu0 %v1720_v26, %s3516_s20  ;;  %v1401_v26 = vrot.slane %v3804_v44, 1  ;;  %v1402_v42 = vrot.slane %v3816_v56, 1  ;;  %v1308_v43 = vsel %vm593_vm1, %v1303_v31, %v1307_v32  ;;  %v1377_v33 = vrot.slane %v3809_v48, 1  ;;  %v3896_v48 = vld [vmem:[%s3637_s19 + $0x3c] sm:$0xff]  }
  0x4b   : > { %v1830_v46 = vshrl.u32 %v3859_v21, 16  ;;  %v1837_v44 = vshll.u32 %v3870_v34, 16  ;;  %v1734_v51 = vshrl.u32 %v3866_v30, 16  ;;  %v1741_v52 = vshll.u32 %v3876_v37, 16 }
  0x4c   : > { %v1212_v53 = vsel %vm593_vm1, %v1207_v39, %v1211_v40  ;;  %v1738_v54 = vrot.slane %v1736_v41, 1  ;;  %v1844_v56 = vshll.u32 %v3888_v47, 16  ;;  %v1403_v57 = vsel %vm818_vm0, %v1401_v26, %v1402_v42  ;;  %v3969_v41 = vld [vmem:[%s3619_s15 + $0xbc] ss:$0 sps:$4 sm:$0x11]  }
  0x4d   : > { %1435 = vrot.lane.b32.xlu1 %v1400_v45, %s3515_s16  ;;  %v1378_v45 = vrot.slane %v3826_v61, 1  ;;  %v1839_v61 = vrot.slane %v1837_v44, 1  ;;  %v1743_v60 = vrot.slane %v1741_v52, 1  ;;  %v1748_v0 = vshll.u32 %v3896_v48, 16 }
  0x4e   : > { %1419 = vrot.lane.b32.xlu0 %v1376_v49, %s3515_s16  ;;  %v1834_v49 = vrot.slane %v1832_v36, 1  ;;  %v1404_v2 = vrot.slane %v3821_v58, 1  ;;  %v1405_v3 = vrot.slane %v3843_v7, 1  ;;  %v1846_v5 = vrot.slane %v1844_v56, 1 }
  0x4f   : > { %v1379_v50 = vsel %vm818_vm0, %v1377_v33, %v1378_v45  ;;  %v1849_v6 = vshll.u32 %v3899_v55, 16  ;;  %v1380_v9 = vrot.slane %v3834_v1, 1  ;;  %v1381_v10 = vrot.slane %v3851_v14, 1  ;;  %v3959_v36 = vld [vmem:[%s3619_s15 + $0x50] ss:$0 sps:$4 sm:$0x11]  }
  0x50   : > { %v1746_v58 = vshrl.u32 %v3896_v48, 16  ;;  %v1750_v11 = vrot.slane %v1748_v0, 1  ;;  %v1753_v12 = vshll.u32 %v3907_v63, 16  ;;  %v1406_v1 = vsel %vm818_vm0, %v1404_v2, %v1405_v3  ;;  %v3975_v45 = vld [vmem:[%s3619_s15 + $0x5c] ss:$0 sps:$4 sm:$0x11]  }
  0x51   : > { %1899 = vrot.lane.b32.xlu1 %v1828_v59, %s3516_s20  ;;  %v1835_v59 = vor.u32 %v1834_v49, %v1830_v46  ;;  %v1851_v15 = vrot.slane %v1849_v6, 1  ;;  %v1945_v14 = vrot.slane %v3859_v21, 1  ;;  %v1382_v18 = vsel %vm818_vm0, %v1380_v9, %v1381_v10 }
  0x52   : > { %1883 = vrot.lane.b32.xlu0 %v1732_v62, %s3516_s20  ;;  %v1739_v62 = vor.u32 %v1738_v54, %v1734_v51  ;;  %v1751_v19 = vor.u32 %v1750_v11, %v1746_v58  ;;  %v1755_v20 = vrot.slane %v1753_v12, 1  ;;  %v1921_v24 = vrot.slane %v3866_v30, 1  ;;  %v3985_v54 = vld [vmem:[%s3637_s19 + $0xa8] sm:$0xff]  }
  0x53   : > { %v1840_v8 = vsel %vm593_vm1, %v1835_v59, %v1839_v61  ;;  %v1922_v27 = vrot.slane %v3876_v37, 1  ;;  %v1948_v25 = vrot.slane %v3888_v47, 1  ;;  %v1949_v28 = vrot.slane %v3899_v55, 1  ;;  %v3962_v37 = vld [vmem:[%s3619_s15 + $0x54] sm:$0xff]  }
  0x54   : > { %v1744_v7 = vsel %vm593_vm1, %v1739_v62, %v1743_v60  ;;  %v1924_v29 = vrot.slane %v3896_v48, 1  ;;  %v1925_v31 = vrot.slane %v3907_v63, 1  ;;  %v1312_v32 = vshll.u32 %v3924_v16, 16  ;;  %v3992_v60 = vld [vmem:[%s3637_s19 + $0x48] sm:$0xff]  }
  0x55   : > { %1977 = vrot.lane.b32.xlu1 %v1941_v4, %s3515_s16  ;;  %v1842_v4 = vshrl.u32 %v3888_v47, 16  ;;  %v1216_v30 = vshll.u32 %v3930_v17, 16  ;;  %v1214_v40 = vshrl.u32 %v3930_v17, 16  ;;  %v1923_v46 = vsel %vm818_vm0, %v1921_v24, %v1922_v27  ;;  %v3996_v63 = vld [vmem:[%s3637_s19 + $0xb0] ss:$0 sps:$4 sm:$0x11]  }
  0x56   : > { %1961 = vrot.lane.b32.xlu0 %v1917_v13, %s3515_s16  ;;  %v1314_v42 = vrot.slane %v1312_v32, 1  ;;  %v1221_v47 = vshll.u32 %v3959_v36, 16  ;;  %v1228_v49 = vshll.u32 %v3962_v37, 16  ;;  %v1950_v51 = vsel %vm818_vm0, %v1948_v25, %v1949_v28  ;;  %v4033_v32 = vld [vmem:[%s3637_s19 + $0x5c] ss:$0 sps:$4 sm:$0x11]  }
  0x57   : > { %v1847_v13 = vor.u32 %v1846_v5, %v1842_v4  ;;  %v1926_v52 = vsel %vm818_vm0, %v1924_v29, %v1925_v31  ;;  %v1329_v56 = vshll.u32 %v3969_v41, 16  ;;  %v1233_v62 = vshll.u32 %v3975_v45, 16  ;;  %v4002_v5 = vld [vmem:[%s3637_s19 + $0x50] ss:$0 sps:$4 sm:$0x11]  }
  0x58   : > { %v1223_v61 = vrot.slane %v1221_v47, 1  ;;  %v1856_v0 = vshll.u32 %v3985_v54, 16  ;;  %v1760_v10 = vshll.u32 %v3992_v60, 16  ;;  %v1407_v58 = vrot.slane %v3924_v16, 1 }
  0x59   : > { %1979 = vrot.lane.b32.xlu1 %v1944_v22, %s3515_s16  ;;  %v3934_v22 = vld [vmem:[%s3619_s15 + $0xb0] ss:$0 sps:$4 sm:$0x11]   ;;  %v1852_v21 = vsel %vm593_vm1, %v1847_v13, %v1851_v15  ;;  %v1331_v4 = vrot.slane %v1329_v56, 1  ;;  %v1235_v9 = vrot.slane %v1233_v62, 1  ;;  %v1383_v11 = vrot.slane %v3930_v17, 1 }
  0x5a   : > { %1963 = vrot.lane.b32.xlu0 %v1920_v23, %s3515_s16  ;;  %v1946_v23 = vrot.slane %v3870_v34, 1  ;;  %v3949_v34 = vld [vmem:[%s3619_s15 + $0xb4] sm:$0xff]   ;;  %v1317_v39 = vshll.u32 %v3934_v22, 16  ;;  %v1854_v12 = vshrl.u32 %v3985_v54, 16  ;;  %v1858_v13 = vrot.slane %v1856_v0, 1 }
  0x5b   : > { %v1324_v33 = vshll.u32 %v3949_v34, 16  ;;  %v1861_v15 = vshll.u32 %v3996_v63, 16  ;;  %v1758_v17 = vshrl.u32 %v3992_v60, 16  ;;  %v1777_v47 = vshll.u32 %v4033_v32, 16 }
  0x5c   : > { %v1947_v26 = vsel %vm818_vm0, %v1945_v14, %v1946_v23  ;;  %v1319_v44 = vrot.slane %v1317_v39, 1  ;;  %v1765_v14 = vshll.u32 %v4002_v5, 16  ;;  %v1859_v23 = vor.u32 %v1858_v13, %v1854_v12  ;;  %v4093_v12 = vld [vmem:[%s3955_s30 + $0x74] ss:$0 sps:$4 sm:$0x11]  }
  0x5d   : > { %1357 = vrot.lane.b32.xlu1 %v1296_v35, %s3516_s20  ;;  %v1756_v35 = vsel %vm593_vm1, %v1751_v19, %v1755_v20  ;;  %v1326_v55 = vrot.slane %v1324_v33, 1  ;;  %v1384_v19 = vrot.slane %v3959_v36, 1  ;;  %v1762_v20 = vrot.slane %v1760_v10, 1 }
  0x5e   : > { %1341 = vrot.lane.b32.xlu0 %v1200_v38, %s3516_s20  ;;  %v1310_v38 = vshrl.u32 %v3924_v16, 16  ;;  %v1863_v24 = vrot.slane %v1861_v15, 1  ;;  %v1767_v25 = vrot.slane %v1765_v14, 1  ;;  %v1386_v39 = vrot.slane %v3962_v37, 1 }
  0x5f   : > { %v1385_v29 = vsel %vm818_vm0, %v1383_v11, %v1384_v19  ;;  %v1763_v31 = vor.u32 %v1762_v20, %v1758_v17  ;;  %v1952_v56 = vrot.slane %v3996_v63, 1  ;;  %v1928_v0 = vrot.slane %v4002_v5, 1  ;;  %v4077_v63 = vld [vmem:[%s3955_s30 + $0x6c] sm:$0xff]   ;;  %v4103_v19 = vld [vmem:[%s3955_s30 + $0x14] ss:$0 sps:$4 sm:$0x11]  }
  0x60   : > { %v1315_v48 = vor.u32 %v1314_v42, %v1310_v38  ;;  %v1864_v36 = vsel %vm593_vm1, %v1859_v23, %v1863_v24  ;;  %v1411_v38 = vrot.slane %v3969_v41, 1  ;;  %v4053_v41 = vld [vmem:[%s3955_s30] sm:$0xff]   ;;  %v1931_v5 = vrot.slane %v4033_v32, 1 }
  0x61   : > { %1359 = vrot.lane.b32.xlu1 %v1308_v43, %s3516_s20  ;;  %v1218_v43 = vrot.slane %v1216_v30, 1  ;;  %v1768_v33 = vsel %vm593_vm1, %v1763_v31, %v1767_v25  ;;  %v705_v14 = vshll.u32 %v4077_v63, 16  ;;  %v710_v31 = vshll.u32 %v4093_v12, 16 }
  0x62   : > { %1343 = vrot.lane.b32.xlu0 %v1212_v53, %s3516_s20  ;;  %v1322_v53 = vshrl.u32 %v3949_v34, 16  ;;  %v1320_v2 = vsel %vm593_vm1, %v1315_v48, %v1319_v44  ;;  %v4059_v48 = vld [vmem:[%s3955_s30 + $0x68] ss:$0 sps:$4 sm:$0x11]  }
  0x63   : > { %v1219_v59 = vor.u32 %v1218_v43, %v1214_v40  ;;  %v1387_v40 = vrot.slane %v3975_v45, 1  ;;  %v698_v10 = vshll.u32 %v4059_v48, 16 }
  0x64   : > { %v1327_v3 = vor.u32 %v1326_v55, %v1322_v53  ;;  %v1779_v53 = vrot.slane %v1777_v47, 1  ;;  %v1951_v55 = vrot.slane %v3985_v54, 1 }
  0x65   : > { %1437 = vrot.lane.b32.xlu1 %v1403_v57, %s3515_s16  ;;  %v1226_v57 = vshrl.u32 %v3962_v37, 16  ;;  %v1224_v6 = vsel %vm593_vm1, %v1219_v59, %v1223_v61  ;;  %v4050_v37 = vld [vmem:[%s3955_s30 + $0x60] sm:$0xff]   ;;  %v597_v61 = vshll.u32 %v4053_v41, 16 }
  0x66   : > { %1421 = vrot.lane.b32.xlu0 %v1379_v50, %s3515_s16  ;;  %v1230_v50 = vrot.slane %v1228_v49, 1  ;;  %v693_v59 = vshll.u32 %v4050_v37, 16  ;;  %v1953_v15 = vsel %vm818_vm0, %v1951_v55, %v1952_v56 }
  0x67   : > { %v599_v11 = vrot.slane %v597_v61, 1  ;;  %v847_v61 = vrot.slane %v4093_v12, 1 }
  0x69   : > { %1901 = vrot.lane.b32.xlu1 %v1840_v8, %s3516_s20  ;;  %v1231_v8 = vor.u32 %v1230_v50, %v1226_v57  ;;  %v1927_v57 = vrot.slane %v3992_v60, 1 }
  0x6a   : > { %1885 = vrot.lane.b32.xlu0 %v1744_v7, %s3516_s20  ;;  %v1408_v7 = vrot.slane %v3934_v22, 1  ;;  %v4022_v22 = vld [vmem:[%s3637_s19 + $0x54] sm:$0xff]  }
  0x6b   : > { %v1236_v16 = vsel %vm593_vm1, %v1231_v8, %v1235_v9  ;;  %v1772_v30 = vshll.u32 %v4022_v22, 16  ;;  %v1930_v8 = vrot.slane %v4022_v22, 1  ;;  %v691_v9 = vshrl.u32 %v4050_v37, 16 }
  0x6c   : > { %v1409_v27 = vsel %vm818_vm0, %v1407_v58, %v1408_v7  ;;  %v695_v58 = vrot.slane %v693_v59, 1  ;;  %v595_v7 = vshrl.u32 %v4053_v41, 16  ;;  %v846_v59 = vrot.slane %v4077_v63, 1 }
  0x6d   : > { %1439 = vrot.lane.b32.xlu1 %v1406_v1, %s3515_s16  ;;  %v1332_v1 = vsel %vm593_vm1, %v1327_v3, %v1331_v4  ;;  %v4082_v4 = vld [vmem:[%s3955_s30 + $0xc] sm:$0xff]   ;;  %v1932_v24 = vsel %vm818_vm0, %v1930_v8, %v1931_v5 }
  0x6e   : > { %1423 = vrot.lane.b32.xlu0 %v1382_v18, %s3515_s16  ;;  %v4016_v18 = vld [vmem:[%s3637_s19 + $0xb4] sm:$0xff]   ;;  %v609_v17 = vshll.u32 %v4082_v4, 16  ;;  %v696_v25 = vor.u32 %v695_v58, %v691_v9  ;;  %v3405_v8 = vld [vmem:[%s4795_s3 + $0x8] sm:$0xff]   ;;  %v848_v5 = vsel %vm818_vm0, %v846_v59, %v847_v61 }
  0x6f   : > { %v1868_v28 = vshll.u32 %v4016_v18, 16  ;;  %v1954_v54 = vrot.slane %v4016_v18, 1 }
  0x71   : > { %1903 = vrot.lane.b32.xlu1 %v1852_v21, %s3516_s20  ;;  %v4026_v21 = vld [vmem:[%s3637_s19 + $0xbc] ss:$0 sps:$4 sm:$0x11]   ;;  %v1870_v42 = vrot.slane %v1868_v28, 1  ;;  %v600_v28 = vor.u32 %v599_v11, %v595_v7  ;;  %v3406_v7 = vld [vmem:[%s4795_s3] sm:$0xff]  }
  0x72   : > { %1887 = vrot.lane.b32.xlu0 %v1756_v35, %s3516_s20  ;;  %v1410_v35 = vrot.slane %v3949_v34, 1  ;;  %v1873_v43 = vshll.u32 %v4026_v21, 16  ;;  %v1770_v34 = vshrl.u32 %v4022_v22, 16  ;;  %v1955_v3 = vrot.slane %v4026_v21, 1  ;;  %v3407_v11 = vld [vmem:[%s3619_s15 + $0x60] sm:$0xff]  }
  0x73   : > { %v700_v21 = vrot.slane %v698_v10, 1 }
  0x74   : > { %v1412_v45 = vsel %vm818_vm0, %v1410_v35, %v1411_v38  ;;  %v1875_v44 = vrot.slane %v1873_v43, 1  ;;  %v1956_v23 = vsel %vm818_vm0, %v1954_v54, %v1955_v3  ;;  %v607_v35 = vshrl.u32 %v4082_v4, 16 }
  0x75   : > { %1981 = vrot.lane.b32.xlu1 %v1947_v26, %s3515_s16  ;;  %v1866_v26 = vshrl.u32 %v4016_v18, 16  ;;  %v614_v38 = vshll.u32 %v4103_v19, 16  ;;  %v822_v54 = vrot.slane %v4082_v4, 1 }
  0x76   : > { %1965 = vrot.lane.b32.xlu0 %v1923_v46, %s3515_s16  ;;  %v1774_v46 = vrot.slane %v1772_v30, 1 }
  0x77   : > { %v1871_v49 = vor.u32 %v1870_v42, %v1866_v26  ;;  %v712_v42 = vrot.slane %v710_v31, 1 }
  0x79   : > { %1983 = vrot.lane.b32.xlu1 %v1950_v51, %s3515_s16  ;;  %v1388_v51 = vsel %vm818_vm0, %v1386_v39, %v1387_v40  ;;  %v1876_v62 = vsel %vm593_vm1, %v1871_v49, %v1875_v44  ;;  %v701_v40 = vsel %vm593_vm1, %v696_v25, %v700_v21  ;;  %v843_v49 = vrot.slane %v4050_v37, 1  ;;  %v4183_v25 = vld [vmem:[%s3955_s30 + $0x80] ss:$0 sps:$4 sm:$0x11]  }
  0x7a   : > { %1967 = vrot.lane.b32.xlu0 %v1926_v52, %s3515_s16  ;;  %v1775_v52 = vor.u32 %v1774_v46, %v1770_v34  ;;  %v616_v46 = vrot.slane %v614_v38, 1  ;;  %v844_v44 = vrot.slane %v4059_v48, 1 }
  0x7c   : > { %v1780_v60 = vsel %vm593_vm1, %v1775_v52, %v1779_v53  ;;  %v819_v53 = vrot.slane %v4053_v41, 1  ;;  %v845_v48 = vsel %vm818_vm0, %v843_v49, %v844_v44 }
  0x7d   : > { %1361 = vrot.lane.b32.xlu1 %v1320_v2, %s3516_s20  ;;  %v4074_v2 = vld [vmem:[%s3955_s30 + $0x8] ss:$0 sps:$4 sm:$0x11]  }
  0x7e   : > { %1345 = vrot.lane.b32.xlu0 %v1224_v6, %s3516_s20  ;;  %v820_v55 = vrot.slane %v4074_v2, 1 }
  0x81   : > { %1363 = vrot.lane.b32.xlu1 %v1332_v1, %s3516_s20  ;;  %v602_v1 = vshll.u32 %v4074_v2, 16  ;;  %v823_v2 = vrot.slane %v4103_v19, 1 }
  0x82   : > { %1347 = vrot.lane.b32.xlu0 %v1236_v16, %s3516_s20  ;;  %v1929_v16 = vsel %vm818_vm0, %v1927_v57, %v1928_v0  ;;  %v3404_v57 = vld [vmem:[%s4795_s3 + $0x10] ss:$0 sps:$4 sm:$0x33]   ;;  %v821_v0 = vsel %vm818_vm0, %v819_v53, %v820_v55 }
  0x83   : > { %v604_v30 = vrot.slane %v602_v1, 1  ;;  %3245 = vmatprep.subr.msk.bf16.mxu0 %vm2268_vm2, %v3404_v57  ;;  %3246 = vmatprep.subr.msk.bf16.mxu1 %vm2268_vm2, %v3404_v57  ;;  %v2270_v3 = vsel %vm2268_vm2, %v3404_v57, 0  ;;  %v824_v10 = vsel %vm818_vm0, %v822_v54, %v823_v2  ;;  %v3408_v1 = vld [vmem:[%s3619_s15] sm:$0xff]  }
  0x84   : > { %3202 = vmatpush3.bf16.msra.mxu0 %v2270_v3  ;;  %3242 = vmatpush3.bf16.msra.mxu1 %v2270_v3  ;;  %v3413_v3 = vld [vmem:[%s3637_s19 + $0x6c] sm:$0xff]  }
  0x85   : > { %1441 = vrot.lane.b32.xlu1 %v1409_v27, %s3515_s16  ;;  %v703_v27 = vshrl.u32 %v4077_v63, 16  ;;  %v605_v34 = vsel %vm593_vm1, %v600_v28, %v604_v30  ;;  %3203 = vmatprep.subr.bf16.mxu0 %v3405_v8 }
  0x86   : > { %1425 = vrot.lane.b32.xlu0 %v1385_v29, %s3515_s16  ;;  %v707_v29 = vrot.slane %v705_v14, 1  ;;  %3240 = vmatprep.subr.bf16.mxu1 %v3405_v8 }
  0x88   : > { %v708_v26 = vor.u32 %v707_v29, %v703_v27  ;;  %3204 = vmatpush3.bf16.msra.mxu0 %v3405_v8  ;;  %3243 = vmatpush3.bf16.msra.mxu1 %v3405_v8  ;;  %v3410_v29 = vld [vmem:[%s3619_s15 + $0xc] sm:$0xff]  }
  0x89   : > { %1905 = vrot.lane.b32.xlu1 %v1864_v36, %s3516_s20  ;;  %v611_v36 = vrot.slane %v609_v17, 1  ;;  %3205 = vmatprep.subr.bf16.mxu0 %v3406_v7 }
  0x8a   : > { %1889 = vrot.lane.b32.xlu0 %v1768_v33, %s3516_s20  ;;  %3241 = vmatprep.subr.bf16.mxu1 %v3406_v7 }
  0x8b   : > { %v612_v33 = vor.u32 %v611_v36, %v607_v35  ;;  %v4195_v35 = vld [vmem:[%s3955_s30 + $0x84] sm:$0xff]  }
  0x8c   : > { %3206 = vmatpush3.bf16.msra.mxu0 %v3406_v7  ;;  %3244 = vmatpush3.bf16.msra.mxu1 %v3406_v7  ;;  %v4200_v36 = vld [vmem:[%s3955_s30 + $0x24] sm:$0xff]   ;;  %v727_v61 = vshrl.u32 %v4195_v35, 16  ;;  %v3414_v7 = vld [vmem:[%s3637_s19 + $0xc] sm:$0xff]  }
  0x8d   : > { %1443 = vrot.lane.b32.xlu1 %v1412_v45, %s3515_s16  ;;  %v713_v45 = vsel %vm593_vm1, %v708_v26, %v712_v42  ;;  %v617_v52 = vsel %vm593_vm1, %v612_v33, %v616_v46  ;;  %v722_v42 = vshll.u32 %v4183_v25, 16  ;;  %v4215_v46 = vld [vmem:[%s3955_s30 + $0x8c] ss:$0 sps:$4 sm:$0x11]   ;;  %v633_v44 = vshll.u32 %v4200_v36, 16 }
  0x8e   : > { %1427 = vrot.lane.b32.xlu0 %v1388_v51, %s3515_s16 }
  0x8f   : > { %v4068_v50 = vpop.permute.xlu1 %1429  ;;  %v724_v59 = vrot.slane %v722_v42, 1 }
  0x90   : > { %v4084_v6 = vpop.permute.xlu0 %1413 }
  0x91   : > { %1907 = vrot.lane.b32.xlu1 %v1876_v62, %s3516_s20 }
  0x92   : > { %1891 = vrot.lane.b32.xlu0 %v1780_v60, %s3516_s20 }
  0x93   : > { %v4096_v13 = vpop.permute.xlu1 %1431 }
  0x94   : > { %v4106_v20 = vpop.permute.xlu0 %1415 }
  0x95   : > { %1985 = vrot.lane.b32.xlu1 %v1953_v15, %s3515_s16  ;;  %v4163_v15 = vld [vmem:[%s3955_s30 + $0x78] sm:$0xff]  }
  0x96   : > { %1969 = vrot.lane.b32.xlu0 %v1929_v16, %s3515_s16  ;;  %v4169_v16 = vld [vmem:[%s3955_s30 + $0x18] sm:$0xff]   ;;  %v717_v28 = vshll.u32 %v4163_v15, 16 }
  0x97   : > { %v4114_v32 = vpop.permute.xlu1 %1335  ;;  %v621_v30 = vshll.u32 %v4169_v16, 16 }
  0x98   : > { %v1334_v39 = vpop.permute.xlu0 %1333  ;;  %v1448_v31 = vsel %vm899_vm3, %v3410_v29, %v4114_v32  ;;  %v719_v26 = vrot.slane %v717_v28, 1 }
  0x99   : > { %1987 = vrot.lane.b32.xlu1 %v1956_v23, %s3515_s16  ;;  %v1446_v14 = vsel %vm899_vm3, %v3408_v1, %v1334_v39  ;;  %v715_v39 = vshrl.u32 %v4163_v15, 16 }
  0x9a   : > { %1971 = vrot.lane.b32.xlu0 %v1932_v24, %s3515_s16  ;;  %v3409_v24 = vld [vmem:[%s3619_s15 + $0x6c] sm:$0xff]   ;;  %v1478_v27 = vsel %vm932_vm4, %v1446_v14, %v4084_v6 }
  0x9b   : > { %v1352_v43 = vpop.permute.xlu1 %1351 }
  0x9c   : > { %v1350_v47 = vpop.permute.xlu0 %1349  ;;  %v1464_v21 = vsel %vm899_vm3, %v3409_v24, %v1352_v43  ;;  %v619_v43 = vshrl.u32 %v4169_v16, 16 }
  0x9d   : > { %802 = vrot.lane.b32.xlu1 %v701_v40, %s3516_s20  ;;  %v1462_v12 = vsel %vm899_vm3, %v3407_v11, %v1350_v47  ;;  %v1496_v32 = vsel %vm932_vm4, %v1464_v21, %v4096_v13  ;;  %v1480_v40 = vsel %vm932_vm4, %v1448_v31, %v4106_v20  ;;  %v729_v13 = vshll.u32 %v4195_v35, 16  ;;  %v3411_v47 = vld [vmem:[%s3637_s19 + $0x60] sm:$0xff]   ;;  %v4224_v20 = vld [vmem:[%s3955_s30 + $0x2c] ss:$0 sps:$4 sm:$0x11]  }
  0x9e   : > { %786 = vrot.lane.b32.xlu0 %v605_v34, %s3516_s20  ;;  %v1494_v23 = vsel %vm932_vm4, %v1462_v12, %v4068_v50  ;;  %v4191_v50 = vld [vmem:[%s3955_s30 + $0x20] ss:$0 sps:$4 sm:$0x11]   ;;  %v623_v34 = vrot.slane %v621_v30, 1  ;;  %v850_v31 = vrot.slane %v4183_v25, 1  ;;  %v853_v25 = vrot.slane %v4215_v46, 1 }
  0x9f   : > { %v4127_v51 = vpop.permute.xlu1 %1893  ;;  %v626_v33 = vshll.u32 %v4191_v50, 16  ;;  %v731_v2 = vrot.slane %v729_v13, 1  ;;  %v829_v13 = vrot.slane %v4224_v20, 1 }
  0xa0   : > { %v4132_v56 = vpop.permute.xlu0 %1877 }
  0xa1   : > { %804 = vrot.lane.b32.xlu1 %v713_v45, %s3516_s20  ;;  %v2006_v45 = vsel %vm899_vm3, %v3411_v47, %v4127_v51  ;;  %v628_v54 = vrot.slane %v626_v33, 1 }
  0xa2   : > { %788 = vrot.lane.b32.xlu0 %v617_v52, %s3516_s20  ;;  %v3412_v52 = vld [vmem:[%s3637_s19] sm:$0xff]  }
  0xa3   : > { %v4142_v62 = vpop.permute.xlu1 %1895  ;;  %v1990_v53 = vsel %vm899_vm3, %v3412_v52, %v4132_v56  ;;  %v734_v56 = vshll.u32 %v4215_v46, 16 }
  0xa4   : > { %v4147_v60 = vpop.permute.xlu0 %1879  ;;  %v2008_v8 = vsel %vm899_vm3, %v3413_v3, %v4142_v62  ;;  %v4305_v3 = vld [vmem:[%s3955_s30 + $0x38] ss:$0 sps:$4 sm:$0x11]  }
  0xa5   : > { %883 = vrot.lane.b32.xlu1 %v845_v48, %s3515_s16  ;;  %v720_v48 = vor.u32 %v719_v26, %v715_v39  ;;  %v1992_v11 = vsel %vm899_vm3, %v3414_v7, %v4147_v60  ;;  %v736_v24 = vrot.slane %v734_v56, 1  ;;  %v825_v39 = vrot.slane %v4169_v16, 1  ;;  %v4300_v56 = vld [vmem:[%s3955_s30 + $0x98] ss:$0 sps:$4 sm:$0x11]   ;;  %v3418_v7 = vld [vmem:[%s3619_s15 + $0x24] sm:$0xff]  }
  0xa6   : > { %867 = vrot.lane.b32.xlu0 %v821_v0, %s3515_s16  ;;  %v624_v0 = vor.u32 %v623_v34, %v619_v43  ;;  %v852_v43 = vrot.slane %v4195_v35, 1 }
  0xa7   : > { %v1974_v9 = vpop.permute.xlu1 %1973  ;;  %v725_v62 = vsel %vm593_vm1, %v720_v48, %v724_v59  ;;  %v4291_v48 = vld [vmem:[%s3955_s30 + $0x30] sm:$0xff]   ;;  %v3416_v59 = vld [vmem:[%s3619_s15 + $0x18] sm:$0xff]  }
  0xa8   : > { %v1958_v58 = vpop.permute.xlu0 %1957  ;;  %v2038_v57 = vsel %vm932_vm4, %v2006_v45, %v1974_v9  ;;  %v631_v9 = vshrl.u32 %v4200_v36, 16  ;;  %v854_v45 = vsel %vm818_vm0, %v852_v43, %v853_v25 }
  0xa9   : > { %885 = vrot.lane.b32.xlu1 %v848_v5, %s3515_s16  ;;  %v2022_v51 = vsel %vm932_vm4, %v1990_v53, %v1958_v58  ;;  %v638_v58 = vshll.u32 %v4224_v20, 16  ;;  %v4284_v53 = vld [vmem:[%s3955_s30 + $0x90] sm:$0xff]   ;;  %v3415_v20 = vld [vmem:[%s3619_s15 + $0x78] sm:$0xff]  }
  0xaa   : > { %869 = vrot.lane.b32.xlu0 %v824_v10, %s3515_s16  ;;  %v635_v10 = vrot.slane %v633_v44, 1 }
  0xab   : > { %v4171_v19 = vpop.permute.xlu1 %1975  ;;  %v640_v28 = vrot.slane %v638_v58, 1  ;;  %v4317_v58 = vld [vmem:[%s3955_s30 + $0x3c] sm:$0xff]  }
  0xac   : > { %v4173_v17 = vpop.permute.xlu0 %1959  ;;  %v2040_v1 = vsel %vm932_vm4, %v2008_v8, %v4171_v19  ;;  %v636_v60 = vor.u32 %v635_v10, %v631_v9  ;;  %v4308_v8 = vld [vmem:[%s3955_s30 + $0x9c] sm:$0xff]   ;;  %v3417_v9 = vld [vmem:[%s3619_s15 + $0x84] sm:$0xff]   ;;  %v645_v10 = vshll.u32 %v4291_v48, 16 }
  0xad   : > { %2085 = vrot.lane.b32.xlu1 %v1494_v23, %s3517_s18  ;;  %v2024_v14 = vsel %vm932_vm4, %v1992_v11, %v4173_v17  ;;  %v732_v23 = vor.u32 %v731_v2, %v727_v61  ;;  %v849_v17 = vrot.slane %v4163_v15, 1 }
  0xae   : > { %2069 = vrot.lane.b32.xlu0 %v1478_v27, %s3517_s18  ;;  %v629_v27 = vsel %vm593_vm1, %v624_v0, %v628_v54 }
  0xaf   : > { %v4197_v6 = vpop.permute.xlu1 %1353  ;;  %v737_v19 = vsel %vm593_vm1, %v732_v23, %v736_v24  ;;  %v851_v42 = vsel %vm818_vm0, %v849_v17, %v850_v31  ;;  %v746_v23 = vshll.u32 %v4300_v56, 16  ;;  %v650_v24 = vshll.u32 %v4305_v3, 16 }
  0xb0   : > { %v4202_v38 = vpop.permute.xlu0 %1337  ;;  %v643_v17 = vshrl.u32 %v4291_v48, 16  ;;  %v647_v31 = vrot.slane %v645_v10, 1 }
  0xb1   : > { %2087 = vrot.lane.b32.xlu1 %v1496_v32, %s3517_s18  ;;  %v641_v32 = vsel %vm593_vm1, %v636_v60, %v640_v28  ;;  %v1450_v61 = vsel %vm899_vm3, %v3416_v59, %v4202_v38  ;;  %v3419_v60 = vld [vmem:[%s3637_s19 + $0x78] sm:$0xff]   ;;  %v748_v25 = vrot.slane %v746_v23, 1 }
  0xb2   : > { %2071 = vrot.lane.b32.xlu0 %v1480_v40, %s3517_s18  ;;  %v826_v40 = vrot.slane %v4191_v50, 1  ;;  %v828_v50 = vrot.slane %v4200_v36, 1 }
  0xb3   : > { %v4221_v49 = vpop.permute.xlu1 %1355 }
  0xb4   : > { %v4230_v55 = vpop.permute.xlu0 %1339  ;;  %v827_v33 = vsel %vm818_vm0, %v825_v39, %v826_v40  ;;  %v830_v46 = vsel %vm818_vm0, %v828_v50, %v829_v13  ;;  %v1468_v38 = vsel %vm899_vm3, %v3417_v9, %v4221_v49  ;;  %v3420_v39 = vld [vmem:[%s3637_s19 + $0x18] sm:$0xff]   ;;  %v652_v50 = vrot.slane %v650_v24, 1 }
  0xb5   : > { %2133 = vrot.lane.b32.xlu1 %v2038_v57, %s3518_s27  ;;  %v1466_v57 = vsel %vm899_vm3, %v3415_v20, %v4197_v6  ;;  %v741_v6 = vshll.u32 %v4284_v53, 16  ;;  %v1452_v11 = vsel %vm899_vm3, %v3418_v7, %v4230_v55  ;;  %v4332_v55 = vld [vmem:[%s3955_s30 + $0xa4] ss:$0 sps:$4 sm:$0x11]   ;;  %v831_v24 = vrot.slane %v4291_v48, 1 }
  0xb6   : > { %2117 = vrot.lane.b32.xlu0 %v2022_v51, %s3518_s27 }
  0xb7   : > { %v1434_v5 = vpop.permute.xlu1 %1433 }
  0xb8   : > { %v1418_v12 = vpop.permute.xlu0 %1417  ;;  %v1498_v54 = vsel %vm932_vm4, %v1466_v57, %v1434_v5  ;;  %v648_v57 = vor.u32 %v647_v31, %v643_v17  ;;  %v858_v17 = vrot.slane %v4308_v8, 1 }
  0xb9   : > { %2135 = vrot.lane.b32.xlu1 %v2040_v1, %s3518_s27  ;;  %v1482_v2 = vsel %vm932_vm4, %v1450_v61, %v1418_v12  ;;  %v3422_v61 = vld [vmem:[%s3637_s19 + $0x24] sm:$0xff]  }
  0xba   : > { %2119 = vrot.lane.b32.xlu0 %v2024_v14, %s3518_s27  ;;  %v739_v14 = vshrl.u32 %v4284_v53, 16 }
  0xbb   : > { %v4253_v21 = vpop.permute.xlu1 %1897 }
  0xbc   : > { %v4256_v29 = vpop.permute.xlu0 %1881  ;;  %v2010_v28 = vsel %vm899_vm3, %v3419_v60, %v4253_v21 }
  0xbd   : > { %806 = vrot.lane.b32.xlu1 %v725_v62, %s3516_s20  ;;  %v743_v62 = vrot.slane %v741_v6, 1  ;;  %v1994_v40 = vsel %vm899_vm3, %v3420_v39, %v4256_v29  ;;  %v655_v29 = vshrl.u32 %v4317_v58, 16 }
  0xbe   : > { %790 = vrot.lane.b32.xlu0 %v629_v27, %s3516_s20  ;;  %v753_v27 = vshll.u32 %v4308_v8, 16 }
  0xbf   : > { %v1436_v30 = vpop.permute.xlu1 %1435  ;;  %v744_v43 = vor.u32 %v743_v62, %v739_v14  ;;  %v856_v14 = vrot.slane %v4300_v56, 1  ;;  %v859_v56 = vrot.slane %v4332_v55, 1 }
  0xc0   : > { %v1420_v26 = vpop.permute.xlu0 %1419  ;;  %v1500_v1 = vsel %vm932_vm4, %v1468_v38, %v1436_v30  ;;  %v4342_v30 = vld [vmem:[%s3955_s30 + $0x44] ss:$0 sps:$4 sm:$0x11]   ;;  %v755_v13 = vrot.slane %v753_v27, 1  ;;  %v832_v27 = vrot.slane %v4305_v3, 1  ;;  %v834_v3 = vrot.slane %v4317_v58, 1 }
  0xc1   : > { %808 = vrot.lane.b32.xlu1 %v737_v19, %s3516_s20  ;;  %v1484_v49 = vsel %vm932_vm4, %v1452_v11, %v1420_v26  ;;  %v653_v11 = vsel %vm593_vm1, %v648_v57, %v652_v50  ;;  %v835_v39 = vrot.slane %v4342_v30, 1 }
  0xc2   : > { %792 = vrot.lane.b32.xlu0 %v641_v32, %s3516_s20  ;;  %v657_v32 = vshll.u32 %v4317_v58, 16 }
  0xc3   : > { %v4271_v34 = vpop.permute.xlu1 %1899 }
  0xc4   : > { %v4276_v47 = vpop.permute.xlu0 %1883  ;;  %v659_v59 = vrot.slane %v657_v32, 1  ;;  %v833_v32 = vsel %vm818_vm0, %v831_v24, %v832_v27 }
  0xc5   : > { %887 = vrot.lane.b32.xlu1 %v851_v42, %s3515_s16 }
  0xc6   : > { %871 = vrot.lane.b32.xlu0 %v827_v33, %s3515_s16  ;;  %v751_v33 = vshrl.u32 %v4308_v8, 16 }
  0xc7   : > { %v1978_v44 = vpop.permute.xlu1 %1977 }
  0xc8   : > { %v1962_v52 = vpop.permute.xlu0 %1961  ;;  %v2042_v42 = vsel %vm932_vm4, %v2010_v28, %v1978_v44  ;;  %v756_v38 = vor.u32 %v755_v13, %v751_v33  ;;  %v3423_v33 = vld [vmem:[%s3619_s15 + $0x90] sm:$0xff]  }
  0xc9   : > { %889 = vrot.lane.b32.xlu1 %v854_v45, %s3515_s16  ;;  %v2026_v21 = vsel %vm932_vm4, %v1994_v40, %v1962_v52  ;;  %v758_v45 = vshll.u32 %v4332_v55, 16  ;;  %v662_v52 = vshll.u32 %v4342_v30, 16  ;;  %v836_v55 = vsel %vm818_vm0, %v834_v3, %v835_v39  ;;  %v4404_v30 = vld [vmem:[%s3955_s30 + $0x48] sm:$0xff]  }
  0xca   : > { %873 = vrot.lane.b32.xlu0 %v830_v46, %s3515_s16  ;;  %v3421_v46 = vld [vmem:[%s3637_s19 + $0x84] sm:$0xff]  }
  0xcb   : > { %v1980_v51 = vpop.permute.xlu1 %1979  ;;  %v2012_v44 = vsel %vm899_vm3, %v3421_v46, %v4271_v34  ;;  %v749_v34 = vsel %vm593_vm1, %v744_v43, %v748_v25  ;;  %v760_v10 = vrot.slane %v758_v45, 1  ;;  %v4400_v25 = vld [vmem:[%s3955_s30 + $0xa8] sm:$0xff]   ;;  %v3424_v45 = vld [vmem:[%s3619_s15 + $0x30] sm:$0xff]  }
  0xcc   : > { %v1964_v0 = vpop.permute.xlu0 %1963  ;;  %v2044_v6 = vsel %vm932_vm4, %v2012_v44, %v1980_v51 }
  0xcd   : > { %2089 = vrot.lane.b32.xlu1 %v1498_v54, %s3517_s18  ;;  %v1996_v54 = vsel %vm899_vm3, %v3422_v61, %v4276_v47  ;;  %v761_v51 = vsel %vm593_vm1, %v756_v38, %v760_v10  ;;  %v669_v61 = vshll.u32 %v4404_v30, 16 }
  0xce   : > { %2073 = vrot.lane.b32.xlu0 %v1482_v2, %s3517_s18  ;;  %v2028_v9 = vsel %vm932_vm4, %v1996_v54, %v1964_v0  ;;  %v855_v0 = vrot.slane %v4284_v53, 1  ;;  %v4425_v54 = vld [vmem:[%s3955_s30 + $0xb4] sm:$0xff]  }
  0xcf   : > { %v4313_v5 = vpop.permute.xlu1 %1357 }
  0xd0   : > { %v4322_v12 = vpop.permute.xlu0 %1341  ;;  %v857_v28 = vsel %vm818_vm0, %v855_v0, %v856_v14  ;;  %v1470_v50 = vsel %vm899_vm3, %v3423_v33, %v4313_v5  ;;  %v4421_v5 = vld [vmem:[%s3955_s30 + $0x50] ss:$0 sps:$4 sm:$0x11]   ;;  %v4449_v14 = vld [vmem:[%s3955_s30 + $0xbc] ss:$0 sps:$4 sm:$0x11]  }
  0xd1   : > { %2091 = vrot.lane.b32.xlu1 %v1500_v1, %s3517_s18  ;;  %v660_v1 = vor.u32 %v659_v59, %v655_v29  ;;  %v1454_v29 = vsel %vm899_vm3, %v3424_v45, %v4322_v12  ;;  %v4416_v59 = vld [vmem:[%s3955_s30 + $0xb0] ss:$0 sps:$4 sm:$0x11]   ;;  %v3425_v12 = vld [vmem:[%s3619_s15 + $0x9c] sm:$0xff]   ;;  %v674_v0 = vshll.u32 %v4421_v5, 16 }
  0xd2   : > { %2075 = vrot.lane.b32.xlu0 %v1484_v49, %s3517_s18  ;;  %v664_v49 = vrot.slane %v662_v52, 1  ;;  %v765_v52 = vshll.u32 %v4400_v25, 16 }
  0xd3   : > { %v4338_v19 = vpop.permute.xlu1 %1359 }
  0xd4   : > { %v4348_v26 = vpop.permute.xlu0 %1343  ;;  %v665_v23 = vsel %vm593_vm1, %v660_v1, %v664_v49  ;;  %v767_v1 = vrot.slane %v765_v52, 1  ;;  %v770_v49 = vshll.u32 %v4416_v59, 16 }
  0xd5   : > { %2137 = vrot.lane.b32.xlu1 %v2042_v42, %s3518_s27  ;;  %v860_v42 = vsel %vm818_vm0, %v858_v17, %v859_v56  ;;  %v3428_v17 = vld [vmem:[%s3637_s19 + $0x30] sm:$0xff]  }
  0xd6   : > { %2121 = vrot.lane.b32.xlu0 %v2026_v21, %s3518_s27 }
  0xd7   : > { %v1438_v20 = vpop.permute.xlu1 %1437 }
  0xd8   : > { %v1422_v2 = vpop.permute.xlu0 %1421  ;;  %v1502_v46 = vsel %vm932_vm4, %v1470_v50, %v1438_v20  ;;  %v1472_v20 = vsel %vm899_vm3, %v3425_v12, %v4338_v19  ;;  %v676_v50 = vrot.slane %v674_v0, 1 }
  0xd9   : > { %2139 = vrot.lane.b32.xlu1 %v2044_v6, %s3518_s27  ;;  %v1486_v57 = vsel %vm932_vm4, %v1454_v29, %v1422_v2  ;;  %v4433_v6 = vld [vmem:[%s3955_s30 + $0x54] sm:$0xff]   ;;  %v3429_v29 = vld [vmem:[%s3637_s19 + $0x9c] sm:$0xff]  }
  0xda   : > { %2123 = vrot.lane.b32.xlu0 %v2028_v9, %s3518_s27  ;;  %v3426_v9 = vld [vmem:[%s3619_s15 + $0x3c] sm:$0xff]  }
  0xdb   : > { %v4369_v7 = vpop.permute.xlu1 %1901 }
  0xdc   : > { %v4372_v47 = vpop.permute.xlu0 %1885 }
  0xdd   : > { %810 = vrot.lane.b32.xlu1 %v749_v34, %s3516_s20  ;;  %v1456_v34 = vsel %vm899_vm3, %v3426_v9, %v4348_v26  ;;  %v671_v26 = vrot.slane %v669_v61, 1  ;;  %v1998_v56 = vsel %vm899_vm3, %v3428_v17, %v4372_v47  ;;  %v782_v47 = vshll.u32 %v4449_v14, 16  ;;  %v3430_v61 = vld [vmem:[%s3637_s19 + $0x3c] sm:$0xff]  }
  0xde   : > { %794 = vrot.lane.b32.xlu0 %v653_v11, %s3516_s20  ;;  %v763_v11 = vshrl.u32 %v4400_v25, 16 }
  0xdf   : > { %v1440_v62 = vpop.permute.xlu1 %1439 }
  0xe0   : > { %v1424_v60 = vpop.permute.xlu0 %1423  ;;  %v1504_v38 = vsel %vm932_vm4, %v1472_v20, %v1440_v62  ;;  %v777_v62 = vshll.u32 %v4425_v54, 16 }
  0xe1   : > { %812 = vrot.lane.b32.xlu1 %v761_v51, %s3516_s20  ;;  %v1488_v19 = vsel %vm932_vm4, %v1456_v34, %v1424_v60  ;;  %v667_v51 = vshrl.u32 %v4404_v30, 16  ;;  %v4458_v60 = vld [vmem:[%s3955_s30 + $0x5c] ss:$0 sps:$4 sm:$0x11]   ;;  %s369_s30 = sand.u32 1, %s3497_s22  }
  0xe2   : > { %796 = vrot.lane.b32.xlu0 %v665_v23, %s3516_s20  ;;  %v3427_v23 = vld [vmem:[%s3637_s19 + $0x90] sm:$0xff]   ;;  %v779_v45 = vrot.slane %v777_v62, 1  ;;  %v686_v52 = vshll.u32 %v4458_v60, 16  ;;  %s2896_s8 = sshll.u32 %s369_s30, 7  ;;  %s4746_s24 = scalar_lea.sflag [#allocation3], %s369_s30 }
  0xe3   : > { %v4387_v31 = vpop.permute.xlu1 %1903  ;;  %v2014_v24 = vsel %vm899_vm3, %v3427_v23, %v4369_v7  ;;  %v768_v7 = vor.u32 %v767_v1, %v763_v11  ;;  %v672_v33 = vor.u32 %v671_v26, %v667_v51  ;;  %v784_v11 = vrot.slane %v782_v47, 1  ;;  %s4669_s11 = scalar_lea.vmem [#allocation2], %s2896_s8 }
  0xe4   : > { %v4392_v40 = vpop.permute.xlu0 %1887  ;;  %v688_v51 = vrot.slane %v686_v52, 1  ;;  %v837_v23 = vrot.slane %v4404_v30, 1  ;;  %s2721_s13 = sshll.u32 %s4669_s11, 4  ;;  %s4740_s13 = int_to_ptr.vmem [resolvable:$true] %s2721_s13 }
  0xe5   : > { %891 = vrot.lane.b32.xlu1 %v857_v28, %s3515_s16  ;;  %v681_v28 = vshll.u32 %v4433_v6, 16  ;;  %v2000_v12 = vsel %vm899_vm3, %v3430_v61, %v4392_v40  ;;  %v677_v1 = vsel %vm593_vm1, %v672_v33, %v676_v50  ;;  %v3433_v61 = vld [vmem:[%s3619_s15 + $0xb4] sm:$0xff]  }
  0xe6   : > { %875 = vrot.lane.b32.xlu0 %v833_v32, %s3515_s16 }
  0xe7   : > { %v1982_v21 = vpop.permute.xlu1 %1981 }
  0xe8   : > { %v1966_v43 = vpop.permute.xlu0 %1965  ;;  %v2046_v32 = vsel %vm932_vm4, %v2014_v24, %v1982_v21  ;;  %v2016_v21 = vsel %vm899_vm3, %v3429_v29, %v4387_v31  ;;  %v838_v24 = vrot.slane %v4421_v5, 1  ;;  %v841_v5 = vrot.slane %v4458_v60, 1  ;;  %v3432_v29 = vld [vmem:[%s3619_s15 + $0x48] sm:$0xff]  }
  0xe9   : > { %893 = vrot.lane.b32.xlu1 %v860_v42, %s3515_s16  ;;  %v2030_v39 = vsel %vm932_vm4, %v1998_v56, %v1966_v43  ;;  %v772_v42 = vrot.slane %v770_v49, 1  ;;  %v679_v43 = vshrl.u32 %v4433_v6, 16  ;;  %v864_v56 = vrot.slane %v4425_v54, 1 }
  0xea   : > { %877 = vrot.lane.b32.xlu0 %v836_v55, %s3515_s16  ;;  %v775_v55 = vshrl.u32 %v4425_v54, 16 }
  0xeb   : > { %v1984_v13 = vpop.permute.xlu1 %1983  ;;  %v773_v31 = vsel %vm593_vm1, %v768_v7, %v772_v42  ;;  %v840_v7 = vrot.slane %v4433_v6, 1 }
  0xec   : > { %v1968_v44 = vpop.permute.xlu0 %1967  ;;  %v2048_v20 = vsel %vm932_vm4, %v2016_v21, %v1984_v13  ;;  %v861_v13 = vrot.slane %v4400_v25, 1 }
  0xed   : > { %2093 = vrot.lane.b32.xlu1 %v1502_v46, %s3517_s18  ;;  %v2032_v34 = vsel %vm932_vm4, %v2000_v12, %v1968_v44  ;;  %v862_v44 = vrot.slane %v4416_v59, 1  ;;  %v842_v50 = vsel %vm818_vm0, %v840_v7, %v841_v5 }
  0xee   : > { %2077 = vrot.lane.b32.xlu0 %v1486_v57, %s3517_s18  ;;  %v683_v57 = vrot.slane %v681_v28, 1 }
  0xef   : > { %v4430_v2 = vpop.permute.xlu1 %1361  ;;  %v863_v17 = vsel %vm818_vm0, %v861_v13, %v862_v44 }
  0xf0   : > { %v4439_v10 = vpop.permute.xlu0 %1345  ;;  %v684_v49 = vor.u32 %v683_v57, %v679_v43 }
  0xf1   : > { %2095 = vrot.lane.b32.xlu1 %v1504_v38, %s3517_s18  ;;  %v780_v38 = vor.u32 %v779_v45, %v775_v55  ;;  %v3431_v45 = vld [vmem:[%s3619_s15 + $0xa8] sm:$0xff]   ;;  %v1458_v21 = vsel %vm899_vm3, %v3432_v29, %v4439_v10 }
  0xf2   : > { %2079 = vrot.lane.b32.xlu0 %v1488_v19, %s3517_s18  ;;  %v689_v62 = vsel %vm593_vm1, %v684_v49, %v688_v51  ;;  %v1474_v60 = vsel %vm899_vm3, %v3431_v45, %v4430_v2 }
  0xf3   : > { %v4455_v27 = vpop.permute.xlu1 %1363  ;;  %v785_v40 = vsel %vm593_vm1, %v780_v38, %v784_v11 }
  0xf4   : > { %v4465_v3 = vpop.permute.xlu0 %1347  ;;  %v1476_v2 = vsel %vm899_vm3, %v3433_v61, %v4455_v27 }
  0xf5   : > { %2141 = vrot.lane.b32.xlu1 %v2046_v32, %s3518_s27  ;;  %v865_v32 = vrot.slane %v4449_v14, 1 }
  0xf6   : > { %2125 = vrot.lane.b32.xlu0 %v2030_v39, %s3518_s27  ;;  %v839_v39 = vsel %vm818_vm0, %v837_v23, %v838_v24 }
  0xf7   : > { %v1442_v46 = vpop.permute.xlu1 %1441  ;;  %v866_v55 = vsel %vm818_vm0, %v864_v56, %v865_v32 }
  0xf8   : > { %v1426_v9 = vpop.permute.xlu0 %1425  ;;  %v1506_v43 = vsel %vm932_vm4, %v1474_v60, %v1442_v46 }
  0xf9   : > { %2143 = vrot.lane.b32.xlu1 %v2048_v20, %s3518_s27  ;;  %v1490_v52 = vsel %vm932_vm4, %v1458_v21, %v1426_v9  ;;  %v3434_v20 = vld [vmem:[%s3619_s15 + $0x54] sm:$0xff]   ;;  %v3435_v9 = vld [vmem:[%s3637_s19 + $0xa8] sm:$0xff]   ;;  %s3519_s15 = smov [#allocation2]  }
  0xfa   : > { %2127 = vrot.lane.b32.xlu0 %v2032_v34, %s3518_s27  ;;  %v1460_v10 = vsel %vm899_vm3, %v3434_v20, %v4465_v3 }
  0xfb   : > { %v1906_v19 = vpop.permute.xlu1 %1905 }
  0xfc   : > { %v1890_v26 = vpop.permute.xlu0 %1889  ;;  %v2018_v38 = vsel %vm899_vm3, %v3435_v9, %v1906_v19 }
  0xfd   : > { %814 = vrot.lane.b32.xlu1 %v773_v31, %s3516_s20 }
  0xfe   : > { %798 = vrot.lane.b32.xlu0 %v677_v1, %s3516_s20  ;;  %v3436_v1 = vld [vmem:[%s3637_s19 + $0x48] sm:$0xff]  }
  0xff   : > { %v1444_v0 = vpop.permute.xlu1 %1443  ;;  %v2002_v27 = vsel %vm899_vm3, %v3436_v1, %v1890_v26 }
 0x100   : > { %v1428_v28 = vpop.permute.xlu0 %1427  ;;  %v1508_v34 = vsel %vm932_vm4, %v1476_v2, %v1444_v0 }
 0x101   : > { %816 = vrot.lane.b32.xlu1 %v785_v40, %s3516_s20  ;;  %v1492_v31 = vsel %vm932_vm4, %v1460_v10, %v1428_v28 }
 0x102   : > { %800 = vrot.lane.b32.xlu0 %v689_v62, %s3516_s20 }
 0x103   : > { %v1908_v59 = vpop.permute.xlu1 %1907 }
 0x104   : > { %v1892_v42 = vpop.permute.xlu0 %1891  ;;  %v2020_v40 = vsel %vm899_vm3, %v4016_v18, %v1908_v59 }
 0x105   : > { %895 = vrot.lane.b32.xlu1 %v863_v17, %s3515_s16  ;;  %v2004_v19 = vsel %vm899_vm3, %v4022_v22, %v1892_v42 }
 0x106   : > { %879 = vrot.lane.b32.xlu0 %v839_v39, %s3515_s16 }
 0x107   : > { %v1986_v33 = vpop.permute.xlu1 %1985 }
 0x108   : > { %v1970_v14 = vpop.permute.xlu0 %1969  ;;  %v2050_v49 = vsel %vm932_vm4, %v2018_v38, %v1986_v33 }
 0x109   : > { %897 = vrot.lane.b32.xlu1 %v866_v55, %s3515_s16  ;;  %v2034_v3 = vsel %vm932_vm4, %v2002_v27, %v1970_v14 }
 0x10a   : > { %881 = vrot.lane.b32.xlu0 %v842_v50, %s3515_s16  ;;  %s3441_s16 = sshll.u32 %s3519_s15, 4  ;;  %s3442_s16 = int_to_ptr.vmem [resolvable:$false] %s3441_s16 }
 0x10b   : > { %v1988_v47 = vpop.permute.xlu1 %1987  ;;  %s3443_s19 = scalar_lea.vmem %s3442_s16, 4096  ;;  %p3444_p1 = scmp.lt.s32.totalorder %s4740_s13, %s3442_s16 }
 0x10c   : > { %v1972_v57 = vpop.permute.xlu0 %1971  ;;  %v2052_v44 = vsel %vm932_vm4, %v2020_v40, %v1988_v47 }
 0x10d   : > { %2097 = vrot.lane.b32.xlu1 %v1506_v43, %s3517_s18  ;;  %v2036_v26 = vsel %vm932_vm4, %v2004_v19, %v1972_v57 }
 0x10e   : > { %2081 = vrot.lane.b32.xlu0 %v1490_v52, %s3517_s18 }
 0x10f   : > { %v803_v12 = vpop.permute.xlu1 %802 }
 0x110   : > { %v787_v46 = vpop.permute.xlu0 %786  ;;  %v917_v56 = vsel %vm899_vm3, %v4050_v37, %v803_v12 }
 0x111   : > { %2099 = vrot.lane.b32.xlu1 %v1508_v34, %s3517_s18  ;;  %v901_v22 = vsel %vm899_vm3, %v4053_v41, %v787_v46 }
 0x112   : > { %2083 = vrot.lane.b32.xlu0 %v1492_v31, %s3517_s18  ;;  %s4737_s18 = scalar_lea.hbm %s4798_s6, %s3086_s12 }
 0x113   : > { %v805_v11 = vpop.permute.xlu1 %804 }
 0x114   : > { %v789_v51 = vpop.permute.xlu0 %788  ;;  %v919_v37 = vsel %vm899_vm3, %v4077_v63, %v805_v11 }
 0x115   : > { %2145 = vrot.lane.b32.xlu1 %v2050_v49, %s3518_s27  ;;  %v903_v41 = vsel %vm899_vm3, %v4082_v4, %v789_v51 }
 0x116   : > { %2129 = vrot.lane.b32.xlu0 %v2034_v3, %s3518_s27 }
 0x117   : > { %v884_v13 = vpop.permute.xlu1 %883 }
 0x118   : > { %v868_v0 = vpop.permute.xlu0 %867  ;;  %v950_v32 = vsel %vm932_vm4, %v917_v56, %v884_v13 }
 0x119   : > { %2147 = vrot.lane.b32.xlu1 %v2052_v44, %s3518_s27  ;;  %v934_v59 = vsel %vm932_vm4, %v901_v22, %v868_v0 }
 0x11a   : > { %2131 = vrot.lane.b32.xlu0 %v2036_v26, %s3518_s27  ;;  %s3437_s27 = scalar_lea.vmem %s4740_s13, 2048 }
 0x11b   : > { %v886_v62 = vpop.permute.xlu1 %885  ;;  %p3438_p12 = scmp.ne.s32.totalorder %s4740_s13, %s3437_s27  ;;  %p3445_p2 = scmp.lt.s32.totalorder %s3443_s19, %s3437_s27 }
 0x11c   : > { %v870_v23 = vpop.permute.xlu0 %869  ;;  %v952_v50 = vsel %vm932_vm4, %v919_v37, %v886_v62 }
 0x11d   : > { %v936_v14 = vsel %vm932_vm4, %v903_v41, %v870_v23  ;;  %p3439_p13 = pnand %p3438_p12, %p3596_p4  ;;  %p3446_p3 = por %p3445_p2, %p3444_p1 }
 0x11f   : > { %v2086_v24 = vpop.permute.xlu1 %2085  ;;  %p3440_p0 = pneg %p3439_p13 }
 0x120   : > { %v2070_v28 = vpop.permute.xlu0 %2069  ;;  %v2167_v39 = vsel %vm2149_vm5, %v950_v32, %v2086_v24 }
 0x121   : > { %v2151_v5 = vsel %vm2149_vm5, %v934_v59, %v2070_v28  ;;  %p3447_p5 = pnand %p3446_p3, %p3440_p0 }
 0x123   : > { %v2088_v17 = vpop.permute.xlu1 %2087 }
 0x124   : > { %v2072_v18 = vpop.permute.xlu0 %2071  ;;  %v2169_v45 = vsel %vm2149_vm5, %v952_v50, %v2088_v17 }
 0x125   : > { %v2153_v47 = vsel %vm2149_vm5, %v936_v14, %v2072_v18 }
 0x127   : > { %v2134_v7 = vpop.permute.xlu1 %2133 }
 0x128   : > { %v2118_v42 = vpop.permute.xlu0 %2117  ;;  %v2200_v55 = vsel %vm2182_vm6, %v2167_v39, %v2134_v7 }
 0x129   : > { %v2184_v33 = vsel %vm2182_vm6, %v2151_v5, %v2118_v42  ;;  %3223 = vmatprep.mubr.msk.bf16.mxu1 %vm2235_vm7, %v2200_v55 }
 0x12a   : > { %3207 = vmatprep.mubr.msk.bf16.mxu0 %vm2235_vm7, %v2184_v33 }
 0x12b   : > { %v2136_v60 = vpop.permute.xlu1 %2135 }
 0x12c   : > { %v2202_v63 = vsel %vm2182_vm6, %v2169_v45, %v2136_v60  ;;  %v2120_v29 = vpop.permute.xlu0 %2119 }
 0x12d   : > { %v2186_v21 = vsel %vm2182_vm6, %v2153_v47, %v2120_v29  ;;  %3224 = vmatmul.mubr.msk.bf16.vlgmr.msra.gmra.mxu1 %vm2235_vm7, %v2202_v63 }
 0x12e   : > { %3208 = vmatmul.mubr.msk.bf16.vlgmr.msra.gmra.mxu0 %vm2235_vm7, %v2186_v21 }
 0x12f   : > { %v807_v4 = vpop.permute.xlu1 %806 }
 0x130   : > { %v791_v43 = vpop.permute.xlu0 %790  ;;  %v921_v9 = vsel %vm899_vm3, %v4163_v15, %v807_v4 }
 0x131   : > { %v905_v38 = vsel %vm899_vm3, %v4169_v16, %v791_v43 }
 0x133   : > { %v809_v57 = vpop.permute.xlu1 %808 }
 0x134   : > { %v793_v52 = vpop.permute.xlu0 %792  ;;  %v923_v13 = vsel %vm899_vm3, %v4195_v35, %v809_v57 }
 0x135   : > { %v907_v16 = vsel %vm899_vm3, %v4200_v36, %v793_v52 }
 0x137   : > { %v888_v61 = vpop.permute.xlu1 %887 }
 0x138   : > { %v872_v2 = vpop.permute.xlu0 %871  ;;  %v954_v11 = vsel %vm932_vm4, %v921_v9, %v888_v61 }
 0x139   : > { %v938_v1 = vsel %vm932_vm4, %v905_v38, %v872_v2 }
 0x13b   : > { %v890_v12 = vpop.permute.xlu1 %889 }
 0x13c   : > { %v874_v20 = vpop.permute.xlu0 %873  ;;  %v956_v19 = vsel %vm932_vm4, %v923_v13, %v890_v12 }
 0x13d   : > { %v940_v44 = vsel %vm932_vm4, %v907_v16, %v874_v20 }
 0x13f   : > { %v2090_v10 = vpop.permute.xlu1 %2089 }
 0x140   : > { %v2074_v34 = vpop.permute.xlu0 %2073  ;;  %v2171_v27 = vsel %vm2149_vm5, %v954_v11, %v2090_v10 }
 0x141   : > { %v2155_v51 = vsel %vm2149_vm5, %v938_v1, %v2074_v34 }
 0x143   : > { %v2092_v46 = vpop.permute.xlu1 %2091 }
 0x144   : > { %v2076_v31 = vpop.permute.xlu0 %2075  ;;  %v2173_v0 = vsel %vm2149_vm5, %v956_v19, %v2092_v46 }
 0x145   : > { %v2157_v62 = vsel %vm2149_vm5, %v940_v44, %v2076_v31 }
 0x147   : > { %v2138_v49 = vpop.permute.xlu1 %2137 }
 0x148   : > { %v2204_v3 = vsel %vm2182_vm6, %v2171_v27, %v2138_v49  ;;  %v2122_v40 = vpop.permute.xlu0 %2121 }
 0x149   : > { %v2188_v15 = vsel %vm2182_vm6, %v2155_v51, %v2122_v40  ;;  %3227 = vmatprep.mubr.msk.bf16.mxu1 %vm2235_vm7, %v2204_v3 }
 0x14a   : > { %3211 = vmatprep.mubr.msk.bf16.mxu0 %vm2235_vm7, %v2188_v15 }
 0x14b   : > { %v2140_v26 = vpop.permute.xlu1 %2139 }
 0x14c   : > { %v2206_v35 = vsel %vm2182_vm6, %v2173_v0, %v2140_v26  ;;  %v2124_v23 = vpop.permute.xlu0 %2123 }
 0x14d   : > { %v2190_v24 = vsel %vm2182_vm6, %v2157_v62, %v2124_v23  ;;  %3228 = vmatmul.mubr.msk.bf16.gmra.mxu1 %vm2235_vm7, %v2206_v35 }
 0x14e   : > { %3212 = vmatmul.mubr.msk.bf16.gmra.mxu0 %vm2235_vm7, %v2190_v24 }
 0x14f   : > { %v811_v36 = vpop.permute.xlu1 %810 }
 0x150   : > { %v795_v28 = vpop.permute.xlu0 %794  ;;  %v925_v55 = vsel %vm899_vm3, %v4284_v53, %v811_v36 }
 0x151   : > { %v909_v37 = vsel %vm899_vm3, %v4291_v48, %v795_v28 }
 0x153   : > { %v813_v17 = vpop.permute.xlu1 %812 }
 0x154   : > { %v797_v18 = vpop.permute.xlu0 %796  ;;  %v927_v63 = vsel %vm899_vm3, %v4308_v8, %v813_v17 }
 0x155   : > { %v911_v48 = vsel %vm899_vm3, %v4317_v58, %v797_v18 }
 0x157   : > { %v892_v56 = vpop.permute.xlu1 %891 }
 0x158   : > { %v876_v22 = vpop.permute.xlu0 %875  ;;  %v958_v33 = vsel %vm932_vm4, %v925_v55, %v892_v56 }
 0x159   : > { %v942_v41 = vsel %vm932_vm4, %v909_v37, %v876_v22  ;;  %v4650_v22 = vld [vmem:[%s4797_s5] ss:$0 sm:$0xff] }
 0x15b   : > { %v894_v32 = vpop.permute.xlu1 %893 }
 0x15c   : > { %v878_v59 = vpop.permute.xlu0 %877  ;;  %v960_v29 = vsel %vm932_vm4, %v927_v63, %v894_v32 }
 0x15d   : > { %v944_v21 = vsel %vm932_vm4, %v911_v48, %v878_v59 }
 0x15f   : > { %v2094_v39 = vpop.permute.xlu1 %2093 }
 0x160   : > { %v2078_v7 = vpop.permute.xlu0 %2077  ;;  %v2175_v50 = vsel %vm2149_vm5, %v958_v33, %v2094_v39 }
 0x161   : > { %v2159_v45 = vsel %vm2149_vm5, %v942_v41, %v2078_v7 }
 0x163   : > { %v2096_v5 = vpop.permute.xlu1 %2095 }
 0x164   : > { %v2080_v42 = vpop.permute.xlu0 %2079  ;;  %v2177_v4 = vsel %vm2149_vm5, %v960_v29, %v2096_v5 }
 0x165   : > { %v2161_v57 = vsel %vm2149_vm5, %v944_v21, %v2080_v42 }
 0x167   : > { %v2142_v14 = vpop.permute.xlu1 %2141 }
 0x168   : > { %v2208_v60 = vsel %vm2182_vm6, %v2175_v50, %v2142_v14  ;;  %v2126_v47 = vpop.permute.xlu0 %2125 }
 0x169   : > { %v2192_v53 = vsel %vm2182_vm6, %v2159_v45, %v2126_v47  ;;  %3231 = vmatprep.mubr.msk.bf16.mxu1 %vm2235_vm7, %v2208_v60 }
 0x16a   : > { %3215 = vmatprep.mubr.msk.bf16.mxu0 %vm2235_vm7, %v2192_v53 }
 0x16b   : > { %v2144_v43 = vpop.permute.xlu1 %2143 }
 0x16c   : > { %v2210_v8 = vsel %vm2182_vm6, %v2177_v4, %v2144_v43  ;;  %v2128_v52 = vpop.permute.xlu0 %2127 }
 0x16d   : > { %v2194_v61 = vsel %vm2182_vm6, %v2161_v57, %v2128_v52  ;;  %3232 = vmatmul.mubr.msk.bf16.gmra.mxu1 %vm2235_vm7, %v2210_v8 }
 0x16e   : > { %3216 = vmatmul.mubr.msk.bf16.gmra.mxu0 %vm2235_vm7, %v2194_v61 }
 0x16f   : > { %v815_v58 = vpop.permute.xlu1 %814 }
 0x170   : > { %v799_v2 = vpop.permute.xlu0 %798  ;;  %v929_v27 = vsel %vm899_vm3, %v4400_v25, %v815_v58 }
 0x171   : > { %v913_v49 = vsel %vm899_vm3, %v4404_v30, %v799_v2 }
 0x173   : > { %v817_v12 = vpop.permute.xlu1 %816 }
 0x174   : > { %v801_v20 = vpop.permute.xlu0 %800  ;;  %v931_v44 = vsel %vm899_vm3, %v4425_v54, %v817_v12 }
 0x175   : > { %v915_v30 = vsel %vm899_vm3, %v4433_v6, %v801_v20  ;;  %v4643_v6 = vld [vmem:[%s4796_s4] ss:$0 sm:$0xff] }
 0x177   : > { %v896_v10 = vpop.permute.xlu1 %895 }
 0x178   : > { %v880_v34 = vpop.permute.xlu0 %879  ;;  %v962_v51 = vsel %vm932_vm4, %v929_v27, %v896_v10 }
 0x179   : > { %v946_v3 = vsel %vm932_vm4, %v913_v49, %v880_v34 }
 0x17b   : > { %v898_v46 = vpop.permute.xlu1 %897 }
 0x17c   : > { %v882_v31 = vpop.permute.xlu0 %881  ;;  %v964_v0 = vsel %vm932_vm4, %v931_v44, %v898_v46 }
 0x17d   : > { %v948_v26 = vsel %vm932_vm4, %v915_v30, %v882_v31 }
 0x17f   : > { %v2098_v9 = vpop.permute.xlu1 %2097 }
 0x180   : > { %v2082_v38 = vpop.permute.xlu0 %2081  ;;  %v2179_v40 = vsel %vm2149_vm5, %v962_v51, %v2098_v9 }
 0x181   : > { %v2163_v15 = vsel %vm2149_vm5, %v946_v3, %v2082_v38 }
 0x183   : > { %v2100_v11 = vpop.permute.xlu1 %2099 }
 0x184   : > { %v2084_v1 = vpop.permute.xlu0 %2083  ;;  %v2181_v62 = vsel %vm2149_vm5, %v964_v0, %v2100_v11 }
 0x185   : > { %v2165_v23 = vsel %vm2149_vm5, %v948_v26, %v2084_v1 }
 0x187   : > { %v2146_v13 = vpop.permute.xlu1 %2145 }
 0x188   : > { %v2212_v16 = vsel %vm2182_vm6, %v2179_v40, %v2146_v13  ;;  %v2130_v19 = vpop.permute.xlu0 %2129 }
 0x189   : > { %v2196_v25 = vsel %vm2182_vm6, %v2163_v15, %v2130_v19  ;;  %3235 = vmatprep.mubr.msk.bf16.mxu1 %vm2235_vm7, %v2212_v16 }
 0x18a   : > { %3219 = vmatprep.mubr.msk.bf16.mxu0 %vm2235_vm7, %v2196_v25 }
 0x18b   : > { %v2148_v35 = vpop.permute.xlu1 %2147 }
 0x18c   : > { %v2214_v54 = vsel %vm2182_vm6, %v2181_v62, %v2148_v35  ;;  %v2132_v24 = vpop.permute.xlu0 %2131 }
 0x18d   : > { %v2198_v36 = vsel %vm2182_vm6, %v2165_v23, %v2132_v24  ;;  %3236 = vmatmul.mubr.msk.bf16.gmra.mxu1 %vm2235_vm7, %v2214_v54 }
 0x18e   : > { %3220 = vmatmul.mubr.msk.bf16.gmra.mxu0 %vm2235_vm7, %v2198_v36 }
 0x1ed   : > { %v3225_v28 = vpop.f32.mrf.mxu1 }
 0x1ee   : > { %v3209_v17 = vpop.f32.mrf.mxu0  ;;  %v2458_v18 = vmul.f32 %v3225_v28, %v4643_v6 }
 0x1ef   : > { %v2442_v56 = vmul.f32 %v3209_v17, %v4643_v6  ;;  %v2370_v32 = vpop.f32.mrf.mxu1 }
 0x1f0   : > { %v2306_v59 = vpop.f32.mrf.mxu0  ;;  %v2456_v39 = vmul.f32 %v4643_v6, %v2370_v32  ;;  %v2497_v42 = vadd.f32 %v4650_v22, %v2458_v18 }
 0x1f1   : > { %v2440_v7 = vmul.f32 %v4643_v6, %v2306_v59  ;;  %v3226_v5 = vpop.f32.mrf.mxu1  ;;  %v2481_v33 = vadd.f32 %v4650_v22, %v2442_v56 }
 0x1f2   : > { %v3210_v55 = vpop.f32.mrf.mxu0  ;;  %v2459_v37 = vmul.f32 %v3226_v5, %v4643_v6  ;;  %v2495_v14 = vadd.f32 %v4650_v22, %v2456_v39  ;;  %v2529_v29 = vmax.f32 %v2497_v42, 0.0 }
 0x1f3   : > { %v2443_v41 = vmul.f32 %v3210_v55, %v4643_v6  ;;  %v2373_v50 = vpop.f32.mrf.mxu1  ;;  %v2479_v63 = vadd.f32 %v4650_v22, %v2440_v7  ;;  %v2513_v43 = vmax.f32 %v2481_v33, 0.0 }
 0x1f4   : > { %v2498_v45 = vadd.f32 %v4650_v22, %v2459_v37  ;;  %v2309_v60 = vpop.f32.mrf.mxu0  ;;  %v2457_v47 = vmul.f32 %v4643_v6, %v2373_v50  ;;  %v2527_v52 = vmax.f32 %v2495_v14, 0.0 }
 0x1f5   : > { %v2482_v53 = vadd.f32 %v4650_v22, %v2443_v41  ;;  %v2441_v48 = vmul.f32 %v4643_v6, %v2309_v60  ;;  %v2511_v2 = vmax.f32 %v2479_v63, 0.0 }
 0x1f6   : > { %v2530_v21 = vmax.f32 %v2498_v45, 0.0  ;;  %v2496_v4 = vadd.f32 %v4650_v22, %v2457_v47 }
 0x1f7   : > { %v2514_v57 = vmax.f32 %v2482_v53, 0.0  ;;  %v2480_v8 = vadd.f32 %v4650_v22, %v2441_v48 }
 0x1f8   : > { %v3135_v61 = vpack.c.bf16 %v2530_v21, %v2529_v29  ;;  %v2528_v58 = vmax.f32 %v2496_v4, 0.0 }
 0x1f9   : > { %v3095_v12 = vpack.c.bf16 %v2514_v57, %v2513_v43  ;;  %v2512_v20 = vmax.f32 %v2480_v8, 0.0 }
 0x1fa   : > { %3175 = vst [vmem:[%s4669_s11 + $0x48] sm:$0xff] %v3135_v61   ;;  %v3130_v10 = vpack.c.bf16 %v2528_v58, %v2527_v52 }
 0x1fb   : > { %3167 = vst [vmem:[%s4669_s11 + $0x8] sm:$0xff] %v3095_v12   ;;  %v3090_v34 = vpack.c.bf16 %v2512_v20, %v2511_v2 }
 0x1fc   : > { %3174 = vst [vmem:[%s4669_s11 + $0x40] sm:$0xff] %v3130_v10  }
 0x1fd   : > { %3091 = vst [vmem:[%s4669_s11] sm:$0xff] %v3090_v34  }
 0x20d   : > { %v3229_v46 = vpop.f32.mrf.mxu1 }
 0x20e   : > { %v3213_v31 = vpop.f32.mrf.mxu0  ;;  %v2462_v9 = vmul.f32 %v3229_v46, %v4643_v6 }
 0x20f   : > { %v2446_v38 = vmul.f32 %v3213_v31, %v4643_v6  ;;  %v2386_v11 = vpop.f32.mrf.mxu1 }
 0x210   : > { %v2322_v1 = vpop.f32.mrf.mxu0  ;;  %v2460_v27 = vmul.f32 %v4643_v6, %v2386_v11  ;;  %v2501_v3 = vadd.f32 %v4650_v22, %v2462_v9 }
 0x211   : > { %v2444_v49 = vmul.f32 %v4643_v6, %v2322_v1  ;;  %v3230_v51 = vpop.f32.mrf.mxu1  ;;  %v2485_v15 = vadd.f32 %v4650_v22, %v2446_v38 }
 0x212   : > { %v3214_v40 = vpop.f32.mrf.mxu0  ;;  %v2463_v13 = vmul.f32 %v3230_v51, %v4643_v6  ;;  %v2499_v44 = vadd.f32 %v4650_v22, %v2460_v27  ;;  %v2533_v23 = vmax.f32 %v2501_v3, 0.0 }
 0x213   : > { %v2447_v16 = vmul.f32 %v3214_v40, %v4643_v6  ;;  %v2389_v19 = vpop.f32.mrf.mxu1  ;;  %v2483_v26 = vadd.f32 %v4650_v22, %v2444_v49  ;;  %v2517_v36 = vmax.f32 %v2485_v15, 0.0 }
 0x214   : > { %v2502_v25 = vadd.f32 %v4650_v22, %v2463_v13  ;;  %v2325_v30 = vpop.f32.mrf.mxu0  ;;  %v2461_v0 = vmul.f32 %v4643_v6, %v2389_v19  ;;  %v2531_v18 = vmax.f32 %v2499_v44, 0.0 }
 0x215   : > { %v2486_v62 = vadd.f32 %v4650_v22, %v2447_v16  ;;  %v2445_v35 = vmul.f32 %v4643_v6, %v2325_v30  ;;  %v2515_v59 = vmax.f32 %v2483_v26, 0.0 }
 0x216   : > { %v2534_v54 = vmax.f32 %v2502_v25, 0.0  ;;  %v2500_v24 = vadd.f32 %v4650_v22, %v2461_v0 }
 0x217   : > { %v2518_v28 = vmax.f32 %v2486_v62, 0.0  ;;  %v2484_v17 = vadd.f32 %v4650_v22, %v2445_v35 }
 0x218   : > { %v3145_v56 = vpack.c.bf16 %v2534_v54, %v2533_v23  ;;  %v2532_v32 = vmax.f32 %v2500_v24, 0.0 }
 0x219   : > { %v3105_v39 = vpack.c.bf16 %v2518_v28, %v2517_v36  ;;  %v2516_v7 = vmax.f32 %v2484_v17, 0.0 }
 0x21a   : > { %3177 = vst [vmem:[%s4669_s11 + $0x58] sm:$0xff] %v3145_v56   ;;  %v3140_v5 = vpack.c.bf16 %v2532_v32, %v2531_v18 }
 0x21b   : > { %3169 = vst [vmem:[%s4669_s11 + $0x18] sm:$0xff] %v3105_v39   ;;  %v3100_v42 = vpack.c.bf16 %v2516_v7, %v2515_v59 }
 0x21c   : > { %3176 = vst [vmem:[%s4669_s11 + $0x50] sm:$0xff] %v3140_v5  }
 0x21d   : > { %3168 = vst [vmem:[%s4669_s11 + $0x10] sm:$0xff] %v3100_v42  }
 0x22d   : > { %v3233_v55 = vpop.f32.mrf.mxu1 }
 0x22e   : > { %v3217_v37 = vpop.f32.mrf.mxu0  ;;  %v2466_v33 = vmul.f32 %v3233_v55, %v4643_v6 }
 0x22f   : > { %v2450_v41 = vmul.f32 %v3217_v37, %v4643_v6  ;;  %v2402_v50 = vpop.f32.mrf.mxu1 }
 0x230   : > { %v2338_v14 = vpop.f32.mrf.mxu0  ;;  %v2464_v45 = vmul.f32 %v4643_v6, %v2402_v50  ;;  %v2505_v63 = vadd.f32 %v4650_v22, %v2466_v33 }
 0x231   : > { %v2448_v60 = vmul.f32 %v4643_v6, %v2338_v14  ;;  %v3234_v47 = vpop.f32.mrf.mxu1  ;;  %v2489_v29 = vadd.f32 %v4650_v22, %v2450_v41 }
 0x232   : > { %v3218_v53 = vpop.f32.mrf.mxu0  ;;  %v2467_v48 = vmul.f32 %v3234_v47, %v4643_v6  ;;  %v2503_v43 = vadd.f32 %v4650_v22, %v2464_v45  ;;  %v2537_v12 = vmax.f32 %v2505_v63, 0.0 }
 0x233   : > { %v2451_v21 = vmul.f32 %v3218_v53, %v4643_v6  ;;  %v2405_v4 = vpop.f32.mrf.mxu1  ;;  %v2487_v61 = vadd.f32 %v4650_v22, %v2448_v60  ;;  %v2521_v34 = vmax.f32 %v2489_v29, 0.0 }
 0x234   : > { %v2506_v57 = vadd.f32 %v4650_v22, %v2467_v48  ;;  %v2341_v8 = vpop.f32.mrf.mxu0  ;;  %v2465_v52 = vmul.f32 %v4643_v6, %v2405_v4  ;;  %v2535_v9 = vmax.f32 %v2503_v43, 0.0 }
 0x235   : > { %v2490_v58 = vadd.f32 %v4650_v22, %v2451_v21  ;;  %v2449_v2 = vmul.f32 %v4643_v6, %v2341_v8  ;;  %v2519_v1 = vmax.f32 %v2487_v61, 0.0 }
 0x236   : > { %v2538_v20 = vmax.f32 %v2506_v57, 0.0  ;;  %v2504_v10 = vadd.f32 %v4650_v22, %v2465_v52 }
 0x237   : > { %v2522_v46 = vmax.f32 %v2490_v58, 0.0  ;;  %v2488_v31 = vadd.f32 %v4650_v22, %v2449_v2 }
 0x238   : > { %v3155_v38 = vpack.c.bf16 %v2538_v20, %v2537_v12  ;;  %v2536_v11 = vmax.f32 %v2504_v10, 0.0 }
 0x239   : > { %v3115_v27 = vpack.c.bf16 %v2522_v46, %v2521_v34  ;;  %v2520_v49 = vmax.f32 %v2488_v31, 0.0 }
 0x23a   : > { %3179 = vst [vmem:[%s4669_s11 + $0x68] sm:$0xff] %v3155_v38   ;;  %v3150_v51 = vpack.c.bf16 %v2536_v11, %v2535_v9 }
 0x23b   : > { %3171 = vst [vmem:[%s4669_s11 + $0x28] sm:$0xff] %v3115_v27   ;;  %v3110_v3 = vpack.c.bf16 %v2520_v49, %v2519_v1 }
 0x23c   : > { %3178 = vst [vmem:[%s4669_s11 + $0x60] sm:$0xff] %v3150_v51  }
 0x23d   : > { %3170 = vst [vmem:[%s4669_s11 + $0x20] sm:$0xff] %v3110_v3  }
 0x24d   : > { %v3237_v40 = vpop.f32.mrf.mxu1 }
 0x24e   : > { %v3221_v13 = vpop.f32.mrf.mxu0  ;;  %v2470_v15 = vmul.f32 %v3237_v40, %v4643_v6 }
 0x24f   : > { %v2454_v16 = vmul.f32 %v3221_v13, %v4643_v6  ;;  %v2418_v19 = vpop.f32.mrf.mxu1 }
 0x250   : > { %v2354_v44 = vpop.f32.mrf.mxu0  ;;  %v2468_v25 = vmul.f32 %v4643_v6, %v2418_v19  ;;  %v2509_v26 = vadd.f32 %v4650_v22, %v2470_v15 }
 0x251   : > { %v2452_v30 = vmul.f32 %v4643_v6, %v2354_v44  ;;  %v3238_v0 = vpop.f32.mrf.mxu1  ;;  %v2493_v23 = vadd.f32 %v4650_v22, %v2454_v16 }
 0x252   : > { %v3222_v62 = vpop.f32.mrf.mxu0  ;;  %v2471_v35 = vmul.f32 %v3238_v0, %v4643_v6  ;;  %v2507_v36 = vadd.f32 %v4650_v22, %v2468_v25  ;;  %v2541_v39 = vmax.f32 %v2509_v26, 0.0 }
 0x253   : > { %v2455_v54 = vmul.f32 %v3222_v62, %v4643_v6  ;;  %v2421_v24 = vpop.f32.mrf.mxu1  ;;  %v2491_v56 = vadd.f32 %v4650_v22, %v2452_v30  ;;  %v2525_v42 = vmax.f32 %v2493_v23, 0.0 }
 0x254   : > { %v2510_v28 = vadd.f32 %v4650_v22, %v2471_v35  ;;  %v2357_v17 = vpop.f32.mrf.mxu0  ;;  %v2469_v18 = vmul.f32 %v4643_v6, %v2421_v24  ;;  %v2539_v33 = vmax.f32 %v2507_v36, 0.0 }
 0x255   : > { %v2494_v32 = vadd.f32 %v4650_v22, %v2455_v54  ;;  %v2453_v59 = vmul.f32 %v4643_v6, %v2357_v17  ;;  %v2523_v14 = vmax.f32 %v2491_v56, 0.0 }
 0x256   : > { %v2542_v7 = vmax.f32 %v2510_v28, 0.0  ;;  %v2508_v5 = vadd.f32 %v4650_v22, %v2469_v18 }
 0x257   : > { %v2526_v55 = vmax.f32 %v2494_v32, 0.0  ;;  %v2492_v37 = vadd.f32 %v4650_v22, %v2453_v59 }
 0x258   : > { %v3165_v41 = vpack.c.bf16 %v2542_v7, %v2541_v39  ;;  %v2540_v50 = vmax.f32 %v2508_v5, 0.0 }
 0x259   : > { %v3125_v6 = vpack.c.bf16 %v2526_v55, %v2525_v42  ;;  %v2524_v45 = vmax.f32 %v2492_v37, 0.0 }
 0x25a   : > { %3181 = vst [vmem:[%s4669_s11 + $0x78] sm:$0xff] %v3165_v41   ;;  %v3160_v60 = vpack.c.bf16 %v2540_v50, %v2539_v33 }
 0x25b   : > { %3173 = vst [vmem:[%s4669_s11 + $0x38] sm:$0xff] %v3125_v6   ;;  %v3120_v22 = vpack.c.bf16 %v2524_v45, %v2523_v14 }
 0x25c   : > { %3180 = vst [vmem:[%s4669_s11 + $0x70] sm:$0xff] %v3160_v60  }
 0x25d   : > { %3172 = vst [vmem:[%s4669_s11 + $0x30] sm:$0xff] %v3120_v22  }
 0x25e   : > { %3450 = shalt.err (!%p3447_p5)
}
 0x25f   : > { %s3451_s28 = scalar_lea.hbm %s4737_s18, 2048  ;;  %s3455_s11 = scalar_lea.hbm %s4798_s6, 4096 }
 0x260   : > { %p3452_p6 = scmp.ne.s32.totalorder %s4737_s18, %s3451_s28  ;;  %p3456_p10 = scmp.lt.s32.totalorder %s4737_s18, %s4798_s6 }
 0x261   : > { %p3457_p11 = scmp.lt.s32.totalorder %s3455_s11, %s3451_s28 }
 0x262   : > { %p3453_p7 = pnand %p3452_p6, %p3596_p4 }
 0x263   : > { %p3458_p12 = por %p3457_p11, %p3456_p10 }
 0x264   : > { %p3454_p9 = pneg %p3453_p7 }
 0x266   : > { %p3459_p13 = pnand %p3458_p12, %p3454_p9 }
 0x268   : > { %3462 = shalt.err (!%p3459_p13)
}
 0x269   : > { %s3520_s17 = smov 64  }
 0x26a   : > { %3248 = dma.vmem_to_hbm [thread:$0]  (%p3596_p4), %s4740_s13, 2048, %s4737_s18, %s4746_s24, %s3520_s17, %s3520_s17, %s3516_s20  }
 0x26b PF: > { %p3254_p0 = scmp.ge.s32.totalorder %s3513_s26, 2  ;;  %s2736_s27 = sand.u32 1, %s3493_s21  }
 0x26c   : > { %s2737_s15 = scalar_lea.sflag [#allocation3], %s2736_s27 }
 0x26d   : > { %p3251_p1 = pnand %p3254_p0, %p3603_p8 }
 0x26f   : > { %p3252_p2 = pneg %p3251_p1 }
 0x271   : > { %3488 = dma.done.wait (%p3252_p2), %s2737_s15, 2048  }
 0x272   : > { %3490 = vsyncadd (%p3252_p2), %s2737_s15, 4294965248  ;;  %s19_s26 = sadd.s32 1, %s3513_s26   ;;  %s4801_s21 = smov %s3497_s22 }
 0x273   : > { %p16_p3 = scmp.ge.s32.totalorder %s19_s26, 4   ;;  %s4802_s22 = smov %s3501_s23 }
 0x274   : > { %s4803_s23 = smov %s3609_s10  ;;  %s4804_s24 = smov %s3509_s25 }
 0x275   : > { %s4805_s25 = smov %s4807_s29  ;;  %18 = sbr.rel (!%p16_p3) target bundleno = 4 (0x4), region = 94 }
 0x27a   :  { %2742 = vsyncpa [#allocation3], 1 }
 0x27b   :  { %2744 = vsyncpa [#allocation3 + $0x1], 1 }

</bundles_post_ra>
